<compile_context>
chip_gen: v6e
topology: v6e:2x2x1
jax: 0.10.0
libtpu: 0.0.40
codegen_flags: <defaults>
</compile_context>

<pallas_src>
import math
import functools

import jax
import jax.numpy as jnp
from jax import lax
from jax.experimental import pallas as pl
from jax.experimental.pallas import tpu as pltpu

LN_EPS = 1e-5  # PyTorch nn.LayerNorm default


def _layer_norm(x, gamma, beta):
    mu = jnp.mean(x, axis=-1, keepdims=True)
    var = jnp.mean((x - mu) ** 2, axis=-1, keepdims=True)
    return (x - mu) * lax.rsqrt(var + LN_EPS) * gamma + beta


# ---------------------------------------------------------------------------
# Fused kernel: full encoder stack.  Grid = (row_blocks, layer).
# ---------------------------------------------------------------------------
def encoder_stack_kernel(emb_ref, pos_ref, msk_ref,            # (Bb,S,H) f32, (S,H) f32, (Bb,1,S) f32
                         wqkv_ref, wo_ref,                     # (H,3H) bf16, (H,H) bf16
                         g1_ref, b1_ref,                       # (1,H) f32
                         w1_ref, bf1_ref,                      # (H,F) bf16, (1,F) f32
                         w2_ref, bf2_ref,                      # (F,H) bf16, (1,H) f32
                         g2_ref, b2_ref,                       # (1,H) f32
                         o_ref,                                # (Bb,S,H) f32 output (layer-resident carry)
                         *, num_heads, scale):
    l = pl.program_id(1)
    Bb, S, H = o_ref.shape
    M = Bb * S
    dh = H // num_heads
    inv_sqrt_dh = 1.0 / math.sqrt(dh)

    # Layer 0: X = embedding * sqrt(H) + positional encoding  (dropout == id).
    @pl.when(l == 0)
    def _seed():
        o_ref[...] = emb_ref[...] * scale + pos_ref[...]

    x = o_ref[...]                                   # (Bb, S, H) f32 carried activation
    x2 = x.reshape(M, H).astype(jnp.bfloat16)

    # Fused Q/K/V projection: one (M,H)@(H,3H) bf16 matmul, f32 accumulation.
    qkv = jnp.dot(x2, wqkv_ref[...], preferred_element_type=jnp.float32)     # (M, 3H)
    qkv_b = qkv.astype(jnp.bfloat16).reshape(Bb, S, 3 * H)                   # one cast for all heads
    q, k, v = qkv_b[..., :H], qkv_b[..., H:2 * H], qkv_b[..., 2 * H:]

    key_ok = msk_ref[...] > 0.5                      # (Bb, 1, S) valid-key mask

    # Heads via a small static loop (batched across Bb inside each einsum);
    # contexts are concatenated and hit W_o with a single matmul.
    ctx_heads = []
    for h in range(num_heads):
        sl = slice(h * dh, (h + 1) * dh)
        scores = jnp.einsum('bqd,bkd->bqk', q[..., sl], k[..., sl],
                            preferred_element_type=jnp.float32) * inv_sqrt_dh
        scores = jnp.where(key_ok, scores, -1e6)     # d2l masked_softmax semantics
        m = jnp.max(scores, axis=-1, keepdims=True)
        e = jnp.exp(scores - m)
        attn = e * pl.reciprocal(jnp.sum(e, axis=-1, keepdims=True), approx=True)
        ctx_heads.append(jnp.einsum('bqk,bkd->bqd', attn.astype(jnp.bfloat16),
                                    v[..., sl], preferred_element_type=jnp.float32))
    ctx = jnp.concatenate(ctx_heads, axis=-1).reshape(M, H)                  # (M, H) f32
    attn_out = jnp.dot(ctx.astype(jnp.bfloat16), wo_ref[...],
                       preferred_element_type=jnp.float32)                   # (M, H)

    # AddNorm 1 (dropout identity), f32.
    y = _layer_norm(x.reshape(M, H) + attn_out, g1_ref[...], b1_ref[...])

    # Position-wise FFN: dense1 -> relu -> dense2 (bf16 MXU, f32 accumulate).
    h1 = jnp.dot(y.astype(jnp.bfloat16), w1_ref[...],
                 preferred_element_type=jnp.float32) + bf1_ref[...]
    h1 = jnp.maximum(h1, 0.0)
    ffn = jnp.dot(h1.astype(jnp.bfloat16), w2_ref[...],
                  preferred_element_type=jnp.float32) + bf2_ref[...]

    # AddNorm 2; write back into the layer-resident output block (the carry).
    o_ref[...] = _layer_norm(y + ffn, g2_ref[...], b2_ref[...]).reshape(Bb, S, H)


# ---------------------------------------------------------------------------
# Parameter init (deterministic, synthetic) and full-encoder wrapper
# ---------------------------------------------------------------------------
def make_positional_encoding(max_len, num_hiddens):
    pos = jnp.arange(max_len, dtype=jnp.float32)[:, None]
    div = jnp.power(10000.0,
                    jnp.arange(0, num_hiddens, 2, dtype=jnp.float32) / num_hiddens)
    ang = pos / div
    P = jnp.zeros((max_len, num_hiddens), jnp.float32)
    P = P.at[:, 0::2].set(jnp.sin(ang))
    P = P.at[:, 1::2].set(jnp.cos(ang))
    return P


def init_params(key, vocab_size, num_hiddens, ffn_num_hiddens, num_layers, max_len=64):
    H, F, L = num_hiddens, ffn_num_hiddens, num_layers
    keys = jax.random.split(key, 1 + 6 * L)
    emb = (jax.random.normal(keys[0], (vocab_size, H)) * 0.1).astype(jnp.float32)
    wqkv, wo, w1, w2, b1, b2 = [], [], [], [], [], []
    for i in range(L):
        ks = keys[1 + 6 * i: 1 + 6 * (i + 1)]
        wqkv.append(jax.random.normal(ks[0], (H, 3 * H)) * 0.1)
        wo.append(jax.random.normal(ks[1], (H, H)) * 0.1)
        w1.append(jax.random.normal(ks[2], (H, F)) * 0.1)
        w2.append(jax.random.normal(ks[3], (F, H)) * 0.1)
        b1.append(jax.random.normal(ks[4], (1, F)) * 0.05)
        b2.append(jax.random.normal(ks[5], (1, H)) * 0.05)
    return {
        'embedding': emb,
        'pos_encoding': make_positional_encoding(max_len, H),
        # stacked per-layer weights; MXU operands stored in bf16
        'wqkv':   jnp.stack(wqkv).astype(jnp.bfloat16),   # (L, H, 3H)
        'wo':     jnp.stack(wo).astype(jnp.bfloat16),     # (L, H, H)
        'ln1_g':  jnp.ones((L, 1, H), jnp.float32),
        'ln1_b':  jnp.zeros((L, 1, H), jnp.float32),
        'ffn_w1': jnp.stack(w1).astype(jnp.bfloat16),     # (L, H, F)
        'ffn_b1': jnp.stack(b1).astype(jnp.float32),      # (L, 1, F)
        'ffn_w2': jnp.stack(w2).astype(jnp.bfloat16),     # (L, F, H)
        'ffn_b2': jnp.stack(b2).astype(jnp.float32),      # (L, 1, H)
        'ln2_g':  jnp.ones((L, 1, H), jnp.float32),
        'ln2_b':  jnp.zeros((L, 1, H), jnp.float32),
    }


def encoder_forward(tokens, valid_lens, params, num_heads, num_hiddens):
    B, S = tokens.shape
    H = num_hiddens
    L = params['wqkv'].shape[0]
    F = params['ffn_w1'].shape[-1]
    assert H % num_heads == 0

    # Row-block split of the batch: keeps a shardable "parallel" axis (v7x has
    # 2 TensorCores) while still folding several batch elements into matmul M.
    NB = 2 if (B >= 2 and B % 2 == 0) else 1
    Bb = B // NB

    # Embedding lookup (gather) stays in plain JAX glue.
    emb = params['embedding'][tokens]                     # (B, S, H) f32
    pos = params['pos_encoding'][:S]                      # (S, H) f32
    # Tiny per-key validity mask (B, 1, S): 1.0 = valid key, 0.0 = masked.
    key_valid = (jnp.arange(S, dtype=jnp.int32)[None, None, :]
                 < valid_lens.reshape(B, 1, 1).astype(jnp.int32)).astype(jnp.float32)

    kernel = functools.partial(encoder_stack_kernel,
                               num_heads=num_heads, scale=math.sqrt(H))

    grid = (NB, L)                                        # row-blocks outer, layers inner
    in_specs = [
        pl.BlockSpec((Bb, S, H),       lambda r, l: (r, 0, 0)),   # emb
        pl.BlockSpec((S, H),           lambda r, l: (0, 0)),      # pos
        pl.BlockSpec((Bb, 1, S),       lambda r, l: (r, 0, 0)),   # key mask
        pl.BlockSpec((None, H, 3 * H), lambda r, l: (l, 0, 0)),   # wqkv
        pl.BlockSpec((None, H, H),     lambda r, l: (l, 0, 0)),   # wo
        pl.BlockSpec((None, 1, H),     lambda r, l: (l, 0, 0)),   # ln1_g
        pl.BlockSpec((None, 1, H),     lambda r, l: (l, 0, 0)),   # ln1_b
        pl.BlockSpec((None, H, F),     lambda r, l: (l, 0, 0)),   # ffn_w1
        pl.BlockSpec((None, 1, F),     lambda r, l: (l, 0, 0)),   # ffn_b1
        pl.BlockSpec((None, F, H),     lambda r, l: (l, 0, 0)),   # ffn_w2
        pl.BlockSpec((None, 1, H),     lambda r, l: (l, 0, 0)),   # ffn_b2
        pl.BlockSpec((None, 1, H),     lambda r, l: (l, 0, 0)),   # ln2_g
        pl.BlockSpec((None, 1, H),     lambda r, l: (l, 0, 0)),   # ln2_b
    ]
    out_spec = pl.BlockSpec((Bb, S, H), lambda r, l: (r, 0, 0))

    # Advisory cost estimate for the surrounding XLA schedule.
    dh = H // num_heads
    flops_layer = (2 * B * S * H * 3 * H            # qkv
                   + 2 * B * num_heads * S * S * dh * 2   # scores + ctx
                   + 2 * B * S * H * H              # W_o
                   + 2 * B * S * H * F * 2)         # FFN
    weight_bytes_layer = 2 * (3 * H * H + H * H + H * F + F * H) + 4 * (4 * H + F + H)
    cost = pl.CostEstimate(
        flops=int(L * flops_layer),
        transcendentals=int(L * B * num_heads * S * S),
        bytes_accessed=int(NB * L * weight_bytes_layer + 4 * (3 * B * S * H + B * S + S * H)))

    compiler_params = pltpu.CompilerParams(
        dimension_semantics=("parallel", "arbitrary"),
        vmem_limit_bytes=64 * 1024 * 1024)

    return pl.pallas_call(
        kernel,
        out_shape=jax.ShapeDtypeStruct((B, S, H), jnp.float32),
        grid_spec=pltpu.PrefetchScalarGridSpec(
            num_scalar_prefetch=0, grid=grid,
            in_specs=in_specs, out_specs=out_spec),
        compiler_params=compiler_params,
        cost_estimate=cost,
    )(emb, pos, key_valid,
      params['wqkv'], params['wo'],
      params['ln1_g'], params['ln1_b'],
      params['ffn_w1'], params['ffn_b1'],
      params['ffn_w2'], params['ffn_b2'],
      params['ln2_g'], params['ln2_b'])


# ---------------------------------------------------------------------------
# Pure-JAX reference mirroring the kernel's bf16-operand / f32-accumulate plan
# ---------------------------------------------------------------------------
def _bf(x):
    return x.astype(jnp.bfloat16).astype(jnp.float32)


def encoder_reference(tokens, valid_lens, params, num_heads, num_hiddens):
    B, S = tokens.shape
    H = num_hiddens
    L = params['wqkv'].shape[0]
    dh = H // num_heads
    x = params['embedding'][tokens] * math.sqrt(H) + params['pos_encoding'][:S][None]
    key_ok = jnp.arange(S)[None, :] < valid_lens[:, None]          # (B, S)
    for l in range(L):
        wqkv = params['wqkv'][l].astype(jnp.float32)
        wo = params['wo'][l].astype(jnp.float32)
        w1 = params['ffn_w1'][l].astype(jnp.float32)
        w2 = params['ffn_w2'][l].astype(jnp.float32)
        bb1, bb2 = params['ffn_b1'][l], params['ffn_b2'][l]
        g1, be1 = params['ln1_g'][l], params['ln1_b'][l]
        g2, be2 = params['ln2_g'][l], params['ln2_b'][l]

        qkv = _bf(jnp.einsum('bsh,hk->bsk', _bf(x), wqkv))
        q, k, v = qkv[..., :H], qkv[..., H:2 * H], qkv[..., 2 * H:]
        ctx_heads = []
        for h in range(num_heads):
            sl = slice(h * dh, (h + 1) * dh)
            scores = jnp.einsum('bqd,bkd->bqk', q[..., sl], k[..., sl]) / math.sqrt(dh)
            scores = jnp.where(key_ok[:, None, :], scores, -1e6)
            attn = jax.nn.softmax(scores, axis=-1)
            ctx_heads.append(jnp.einsum('bqk,bkd->bqd', _bf(attn), v[..., sl]))
        ctx = jnp.concatenate(ctx_heads, axis=-1)
        attn_out = jnp.einsum('bsh,hk->bsk', _bf(ctx), wo)
        y = _layer_norm(x + attn_out, g1, be1)
        h1 = jnp.maximum(jnp.einsum('bsh,hf->bsf', _bf(y), w1) + bb1, 0.0)
        ffn = jnp.einsum('bsf,fh->bsh', _bf(h1), w2) + bb2
        x = _layer_norm(y + ffn, g2, be2)
    return x


if __name__ == "__main__":
    vocab_size = 50
    num_hiddens = 32
    num_heads = 2
    ffn_num_hiddens = 64
    num_layers = 2
    B, S = 4, 8

    key = jax.random.PRNGKey(0)
    k_param, k_tok = jax.random.split(key)
    params = init_params(k_param, vocab_size, num_hiddens, ffn_num_hiddens, num_layers)

    tokens = jax.random.randint(k_tok, (B, S), 0, vocab_size, dtype=jnp.int32)
    valid_lens = jnp.array([8, 5, 6, 3], dtype=jnp.int32)

    out = encoder_forward(tokens, valid_lens, params, num_heads, num_hiddens)
    out = jax.block_until_ready(out)
    assert out.shape == (B, S, num_hiddens) and out.dtype == jnp.float32
    assert bool(jnp.all(jnp.isfinite(out)))

    ref = encoder_reference(tokens, valid_lens, params, num_heads, num_hiddens)
    assert bool(jnp.allclose(out, ref, atol=5e-2, rtol=5e-2))
    print("KERNEL_OK")
</pallas_src>

<mosaic_0001>
module attributes {stable_mosaic.version = 11 : i64} {
  func.func @encoder_stack_kernel(%arg0: i32, %arg1: i32, %arg2: memref<2x8x32xf32, #tpu.memory_space<vmem>>, %arg3: memref<8x32xf32, #tpu.memory_space<vmem>>, %arg4: memref<2x1x8xf32, #tpu.memory_space<vmem>>, %arg5: memref<1x32x96xbf16, #tpu.memory_space<vmem>>, %arg6: memref<1x32x32xbf16, #tpu.memory_space<vmem>>, %arg7: memref<1x1x32xf32, #tpu.memory_space<vmem>>, %arg8: memref<1x1x32xf32, #tpu.memory_space<vmem>>, %arg9: memref<1x32x64xbf16, #tpu.memory_space<vmem>>, %arg10: memref<1x1x64xf32, #tpu.memory_space<vmem>>, %arg11: memref<1x64x32xbf16, #tpu.memory_space<vmem>>, %arg12: memref<1x1x32xf32, #tpu.memory_space<vmem>>, %arg13: memref<1x1x32xf32, #tpu.memory_space<vmem>>, %arg14: memref<1x1x32xf32, #tpu.memory_space<vmem>>, %arg15: memref<2x8x32xf32, #tpu.memory_space<vmem>>) attributes {dimension_semantics = [#tpu.dimension_semantics<parallel>, #tpu.dimension_semantics<arbitrary>], iteration_bounds = array<i64: 2, 2>, scalar_prefetch = 0 : i64, scratch_operands = 0 : i64, tpu.core_type = #tpu.core_type<tc>, window_params = [{transform_indices = @transform_0, window_bounds = array<i64: 2, 8, 32>}, {pipeline_mode = #tpu.pipeline_mode<synchronous>, transform_indices = @transform_1, window_bounds = array<i64: 8, 32>}, {transform_indices = @transform_2, window_bounds = array<i64: 2, 1, 8>}, {transform_indices = @transform_3, window_bounds = array<i64: 1, 32, 96>}, {transform_indices = @transform_4, window_bounds = array<i64: 1, 32, 32>}, {transform_indices = @transform_5, window_bounds = array<i64: 1, 1, 32>}, {transform_indices = @transform_6, window_bounds = array<i64: 1, 1, 32>}, {transform_indices = @transform_7, window_bounds = array<i64: 1, 32, 64>}, {transform_indices = @transform_8, window_bounds = array<i64: 1, 1, 64>}, {transform_indices = @transform_9, window_bounds = array<i64: 1, 64, 32>}, {transform_indices = @transform_10, window_bounds = array<i64: 1, 1, 32>}, {transform_indices = @transform_11, window_bounds = array<i64: 1, 1, 32>}, {transform_indices = @transform_12, window_bounds = array<i64: 1, 1, 32>}, {transform_indices = @transform_13, window_bounds = array<i64: 2, 8, 32>}]} {
    %c0_i32 = arith.constant 0 : i32
    %0 = arith.cmpi eq, %arg1, %c0_i32 : i32
    %1 = arith.extui %0 : i1 to i32
    %c0_i32_0 = arith.constant 0 : i32
    %2 = arith.cmpi ne, %1, %c0_i32_0 : i32
    scf.if %2 {
      %c0_66 = arith.constant 0 : index
      %c0_67 = arith.constant 0 : index
      %c0_68 = arith.constant 0 : index
      %142 = vector.load %arg2[%c0_66, %c0_67, %c0_68] : memref<2x8x32xf32, #tpu.memory_space<vmem>>, vector<2x8x32xf32>
      %cst_69 = arith.constant 5.65685415 : f32
      %143 = vector.broadcast %cst_69 : f32 to vector<2x8x32xf32>
      %144 = arith.mulf %142, %143 : vector<2x8x32xf32>
      %c0_70 = arith.constant 0 : index
      %c0_71 = arith.constant 0 : index
      %145 = vector.load %arg3[%c0_70, %c0_71] : memref<8x32xf32, #tpu.memory_space<vmem>>, vector<8x32xf32>
      %146 = vector.shape_cast %145 : vector<8x32xf32> to vector<1x8x32xf32>
      %147 = vector.broadcast %146 : vector<1x8x32xf32> to vector<2x8x32xf32>
      %148 = arith.addf %144, %147 : vector<2x8x32xf32>
      %c0_72 = arith.constant 0 : index
      %c0_73 = arith.constant 0 : index
      %c0_74 = arith.constant 0 : index
      %149 = vector.load %arg15[%c0_72, %c0_73, %c0_74] : memref<2x8x32xf32, #tpu.memory_space<vmem>>, vector<2x8x32xf32>
      tpu.vector_store %arg15[%c0_72, %c0_73, %c0_74], %148 {strides = array<i32>} : memref<2x8x32xf32, #tpu.memory_space<vmem>>, vector<2x8x32xf32>,
    } else {
    }
    %c0 = arith.constant 0 : index
    %c0_1 = arith.constant 0 : index
    %c0_2 = arith.constant 0 : index
    %3 = vector.load %arg15[%c0, %c0_1, %c0_2] : memref<2x8x32xf32, #tpu.memory_space<vmem>>, vector<2x8x32xf32>
    %4 = vector.shape_cast %3 : vector<2x8x32xf32> to vector<16x32xf32>
    %5 = arith.truncf %4 : vector<16x32xf32> to vector<16x32xbf16>
    %c0_3 = arith.constant 0 : index
    %c0_4 = arith.constant 0 : index
    %c0_5 = arith.constant 0 : index
    %6 = vector.load %arg5[%c0_3, %c0_4, %c0_5] : memref<1x32x96xbf16, #tpu.memory_space<vmem>>, vector<1x32x96xbf16>
    %7 = vector.shape_cast %6 : vector<1x32x96xbf16> to vector<32x96xbf16>
    %cst = arith.constant dense<0.000000e+00> : vector<16x96xf32>
    %8 = tpu.matmul %5, %7, %cst {dimension_numbers = #tpu.dot_dimension_numbers<[1], [0], [0], [1], [0, 0, 1, 1], [], []>} : vector<16x32xbf16>, vector<32x96xbf16>, vector<16x96xf32> -> vector<16x96xf32>
    %9 = arith.truncf %8 : vector<16x96xf32> to vector<16x96xbf16>
    %10 = vector.shape_cast %9 : vector<16x96xbf16> to vector<2x8x96xbf16>
    %11 = vector.extract_strided_slice %10 {offsets = [0, 0, 0], sizes = [2, 8, 32], strides = [1, 1, 1]} : vector<2x8x96xbf16> to vector<2x8x32xbf16>
    %12 = vector.extract_strided_slice %10 {offsets = [0, 0, 32], sizes = [2, 8, 32], strides = [1, 1, 1]} : vector<2x8x96xbf16> to vector<2x8x32xbf16>
    %13 = vector.extract_strided_slice %10 {offsets = [0, 0, 64], sizes = [2, 8, 32], strides = [1, 1, 1]} : vector<2x8x96xbf16> to vector<2x8x32xbf16>
    %c0_6 = arith.constant 0 : index
    %c0_7 = arith.constant 0 : index
    %c0_8 = arith.constant 0 : index
    %14 = vector.load %arg4[%c0_6, %c0_7, %c0_8] : memref<2x1x8xf32, #tpu.memory_space<vmem>>, vector<2x1x8xf32>
    %cst_9 = arith.constant 5.000000e-01 : f32
    %15 = vector.broadcast %cst_9 : f32 to vector<2x1x8xf32>
    %16 = arith.cmpf ogt, %14, %15 : vector<2x1x8xf32>
    %17 = vector.extract_strided_slice %11 {offsets = [0, 0, 0], sizes = [2, 8, 16], strides = [1, 1, 1]} : vector<2x8x32xbf16> to vector<2x8x16xbf16>
    %18 = vector.extract_strided_slice %12 {offsets = [0, 0, 0], sizes = [2, 8, 16], strides = [1, 1, 1]} : vector<2x8x32xbf16> to vector<2x8x16xbf16>
    "tpu.trace_start"() <{level = 10 : i32, message = "bqd,bkd->bqk"}> : () -> ()
    %cst_10 = arith.constant dense<0.000000e+00> : vector<2x8x8xf32>
    %19 = tpu.matmul %17, %18, %cst_10 {dimension_numbers = #tpu.dot_dimension_numbers<[2], [2], [1], [1], [0, 0, 0, 1, 1, 1], [0], [0]>} : vector<2x8x16xbf16>, vector<2x8x16xbf16>, vector<2x8x8xf32> -> vector<2x8x8xf32>
    "tpu.trace_stop"() : () -> ()
    %cst_11 = arith.constant 2.500000e-01 : f32
    %20 = vector.broadcast %cst_11 : f32 to vector<2x8x8xf32>
    %21 = arith.mulf %19, %20 : vector<2x8x8xf32>
    %cst_12 = arith.constant -1.000000e+06 : f32
    %22 = vector.shape_cast %16 : vector<2x1x8xi1> to vector<2x1x8xi1>
    %23 = vector.broadcast %22 : vector<2x1x8xi1> to vector<2x8x8xi1>
    %24 = vector.broadcast %cst_12 : f32 to vector<2x8x8xf32>
    %25 = arith.select %23, %21, %24 : vector<2x8x8xi1>, vector<2x8x8xf32>
    %cst_13 = arith.constant dense<0xFF800000> : vector<2x8xf32>
    %26 = vector.multi_reduction <maximumf>, %25, %cst_13 [2] : vector<2x8x8xf32> to vector<2x8xf32>
    %27 = vector.shape_cast %26 : vector<2x8xf32> to vector<2x8x1xf32>
    %28 = vector.broadcast %27 : vector<2x8x1xf32> to vector<2x8x8xf32>
    %29 = arith.subf %25, %28 : vector<2x8x8xf32>
    %30 = math.exp %29 : vector<2x8x8xf32>
    %cst_14 = arith.constant dense<0.000000e+00> : vector<2x8xf32>
    %31 = vector.multi_reduction <add>, %30, %cst_14 [2] : vector<2x8x8xf32> to vector<2x8xf32>
    %32 = vector.shape_cast %31 : vector<2x8xf32> to vector<2x8x1xf32>
    %33 = tpu.reciprocal %32 {approx = true} : vector<2x8x1xf32> -> vector<2x8x1xf32>
    %34 = vector.broadcast %33 : vector<2x8x1xf32> to vector<2x8x8xf32>
    %35 = arith.mulf %30, %34 : vector<2x8x8xf32>
    %36 = arith.truncf %35 : vector<2x8x8xf32> to vector<2x8x8xbf16>
    %37 = vector.extract_strided_slice %13 {offsets = [0, 0, 0], sizes = [2, 8, 16], strides = [1, 1, 1]} : vector<2x8x32xbf16> to vector<2x8x16xbf16>
    "tpu.trace_start"() <{level = 10 : i32, message = "bqk,bkd->bqd"}> : () -> ()
    %cst_15 = arith.constant dense<0.000000e+00> : vector<2x8x16xf32>
    %38 = tpu.matmul %36, %37, %cst_15 {dimension_numbers = #tpu.dot_dimension_numbers<[2], [1], [1], [2], [0, 0, 0, 1, 1, 2], [0], [0]>} : vector<2x8x8xbf16>, vector<2x8x16xbf16>, vector<2x8x16xf32> -> vector<2x8x16xf32>
    "tpu.trace_stop"() : () -> ()
    %39 = vector.extract_strided_slice %11 {offsets = [0, 0, 16], sizes = [2, 8, 16], strides = [1, 1, 1]} : vector<2x8x32xbf16> to vector<2x8x16xbf16>
    %40 = vector.extract_strided_slice %12 {offsets = [0, 0, 16], sizes = [2, 8, 16], strides = [1, 1, 1]} : vector<2x8x32xbf16> to vector<2x8x16xbf16>
    "tpu.trace_start"() <{level = 10 : i32, message = "bqd,bkd->bqk"}> : () -> ()
    %cst_16 = arith.constant dense<0.000000e+00> : vector<2x8x8xf32>
    %41 = tpu.matmul %39, %40, %cst_16 {dimension_numbers = #tpu.dot_dimension_numbers<[2], [2], [1], [1], [0, 0, 0, 1, 1, 1], [0], [0]>} : vector<2x8x16xbf16>, vector<2x8x16xbf16>, vector<2x8x8xf32> -> vector<2x8x8xf32>
    "tpu.trace_stop"() : () -> ()
    %cst_17 = arith.constant 2.500000e-01 : f32
    %42 = vector.broadcast %cst_17 : f32 to vector<2x8x8xf32>
    %43 = arith.mulf %41, %42 : vector<2x8x8xf32>
    %cst_18 = arith.constant -1.000000e+06 : f32
    %44 = vector.shape_cast %16 : vector<2x1x8xi1> to vector<2x1x8xi1>
    %45 = vector.broadcast %44 : vector<2x1x8xi1> to vector<2x8x8xi1>
    %46 = vector.broadcast %cst_18 : f32 to vector<2x8x8xf32>
    %47 = arith.select %45, %43, %46 : vector<2x8x8xi1>, vector<2x8x8xf32>
    %cst_19 = arith.constant dense<0xFF800000> : vector<2x8xf32>
    %48 = vector.multi_reduction <maximumf>, %47, %cst_19 [2] : vector<2x8x8xf32> to vector<2x8xf32>
    %49 = vector.shape_cast %48 : vector<2x8xf32> to vector<2x8x1xf32>
    %50 = vector.broadcast %49 : vector<2x8x1xf32> to vector<2x8x8xf32>
    %51 = arith.subf %47, %50 : vector<2x8x8xf32>
    %52 = math.exp %51 : vector<2x8x8xf32>
    %cst_20 = arith.constant dense<0.000000e+00> : vector<2x8xf32>
    %53 = vector.multi_reduction <add>, %52, %cst_20 [2] : vector<2x8x8xf32> to vector<2x8xf32>
    %54 = vector.shape_cast %53 : vector<2x8xf32> to vector<2x8x1xf32>
    %55 = tpu.reciprocal %54 {approx = true} : vector<2x8x1xf32> -> vector<2x8x1xf32>
    %56 = vector.broadcast %55 : vector<2x8x1xf32> to vector<2x8x8xf32>
    %57 = arith.mulf %52, %56 : vector<2x8x8xf32>
    %58 = arith.truncf %57 : vector<2x8x8xf32> to vector<2x8x8xbf16>
    %59 = vector.extract_strided_slice %13 {offsets = [0, 0, 16], sizes = [2, 8, 16], strides = [1, 1, 1]} : vector<2x8x32xbf16> to vector<2x8x16xbf16>
    "tpu.trace_start"() <{level = 10 : i32, message = "bqk,bkd->bqd"}> : () -> ()
    %cst_21 = arith.constant dense<0.000000e+00> : vector<2x8x16xf32>
    %60 = tpu.matmul %58, %59, %cst_21 {dimension_numbers = #tpu.dot_dimension_numbers<[2], [1], [1], [2], [0, 0, 0, 1, 1, 2], [0], [0]>} : vector<2x8x8xbf16>, vector<2x8x16xbf16>, vector<2x8x16xf32> -> vector<2x8x16xf32>
    "tpu.trace_stop"() : () -> ()
    %61 = tpu.concatenate %38, %60 in 2 : vector<2x8x16xf32>, vector<2x8x16xf32> -> vector<2x8x32xf32>
    %62 = vector.shape_cast %61 : vector<2x8x32xf32> to vector<16x32xf32>
    %63 = arith.truncf %62 : vector<16x32xf32> to vector<16x32xbf16>
    %c0_22 = arith.constant 0 : index
    %c0_23 = arith.constant 0 : index
    %c0_24 = arith.constant 0 : index
    %64 = vector.load %arg6[%c0_22, %c0_23, %c0_24] : memref<1x32x32xbf16, #tpu.memory_space<vmem>>, vector<1x32x32xbf16>
    %65 = vector.shape_cast %64 : vector<1x32x32xbf16> to vector<32x32xbf16>
    %cst_25 = arith.constant dense<0.000000e+00> : vector<16x32xf32>
    %66 = tpu.matmul %63, %65, %cst_25 {dimension_numbers = #tpu.dot_dimension_numbers<[1], [0], [0], [1], [0, 0, 1, 1], [], []>} : vector<16x32xbf16>, vector<32x32xbf16>, vector<16x32xf32> -> vector<16x32xf32>
    %67 = vector.shape_cast %3 : vector<2x8x32xf32> to vector<16x32xf32>
    %68 = arith.addf %67, %66 : vector<16x32xf32>
    %c0_26 = arith.constant 0 : index
    %c0_27 = arith.constant 0 : index
    %c0_28 = arith.constant 0 : index
    %69 = vector.load %arg7[%c0_26, %c0_27, %c0_28] : memref<1x1x32xf32, #tpu.memory_space<vmem>>, vector<1x1x32xf32>
    %70 = vector.shape_cast %69 : vector<1x1x32xf32> to vector<1x32xf32>
    %c0_29 = arith.constant 0 : index
    %c0_30 = arith.constant 0 : index
    %c0_31 = arith.constant 0 : index
    %71 = vector.load %arg8[%c0_29, %c0_30, %c0_31] : memref<1x1x32xf32, #tpu.memory_space<vmem>>, vector<1x1x32xf32>
    %72 = vector.shape_cast %71 : vector<1x1x32xf32> to vector<1x32xf32>
    %cst_32 = arith.constant dense<0.000000e+00> : vector<16xf32>
    %73 = vector.multi_reduction <add>, %68, %cst_32 [1] : vector<16x32xf32> to vector<16xf32>
    %74 = vector.shape_cast %73 : vector<16xf32> to vector<16x1xf32>
    %cst_33 = arith.constant 3.200000e+01 : f32
    %75 = vector.broadcast %cst_33 : f32 to vector<16x1xf32>
    %76 = arith.divf %74, %75 : vector<16x1xf32>
    %77 = vector.broadcast %76 : vector<16x1xf32> to vector<16x32xf32>
    %78 = arith.subf %68, %77 : vector<16x32xf32>
    %79 = arith.mulf %78, %78 : vector<16x32xf32>
    %cst_34 = arith.constant dense<0.000000e+00> : vector<16xf32>
    %80 = vector.multi_reduction <add>, %79, %cst_34 [1] : vector<16x32xf32> to vector<16xf32>
    %81 = vector.shape_cast %80 : vector<16xf32> to vector<16x1xf32>
    %cst_35 = arith.constant 3.200000e+01 : f32
    %82 = vector.broadcast %cst_35 : f32 to vector<16x1xf32>
    %83 = arith.divf %81, %82 : vector<16x1xf32>
    %84 = vector.broadcast %76 : vector<16x1xf32> to vector<16x32xf32>
    %85 = arith.subf %68, %84 : vector<16x32xf32>
    %cst_36 = arith.constant 9.99999974E-6 : f32
    %86 = vector.broadcast %cst_36 : f32 to vector<16x1xf32>
    %87 = arith.addf %83, %86 : vector<16x1xf32>
    %88 = math.rsqrt %87 : vector<16x1xf32>
    %89 = vector.broadcast %88 : vector<16x1xf32> to vector<16x32xf32>
    %90 = arith.mulf %85, %89 : vector<16x32xf32>
    %91 = vector.broadcast %70 : vector<1x32xf32> to vector<16x32xf32>
    %92 = arith.mulf %90, %91 : vector<16x32xf32>
    %93 = vector.broadcast %72 : vector<1x32xf32> to vector<16x32xf32>
    %94 = arith.addf %92, %93 : vector<16x32xf32>
    %95 = arith.truncf %94 : vector<16x32xf32> to vector<16x32xbf16>
    %c0_37 = arith.constant 0 : index
    %c0_38 = arith.constant 0 : index
    %c0_39 = arith.constant 0 : index
    %96 = vector.load %arg9[%c0_37, %c0_38, %c0_39] : memref<1x32x64xbf16, #tpu.memory_space<vmem>>, vector<1x32x64xbf16>
    %97 = vector.shape_cast %96 : vector<1x32x64xbf16> to vector<32x64xbf16>
    %cst_40 = arith.constant dense<0.000000e+00> : vector<16x64xf32>
    %98 = tpu.matmul %95, %97, %cst_40 {dimension_numbers = #tpu.dot_dimension_numbers<[1], [0], [0], [1], [0, 0, 1, 1], [], []>} : vector<16x32xbf16>, vector<32x64xbf16>, vector<16x64xf32> -> vector<16x64xf32>
    %c0_41 = arith.constant 0 : index
    %c0_42 = arith.constant 0 : index
    %c0_43 = arith.constant 0 : index
    %99 = vector.load %arg10[%c0_41, %c0_42, %c0_43] : memref<1x1x64xf32, #tpu.memory_space<vmem>>, vector<1x1x64xf32>
    %100 = vector.shape_cast %99 : vector<1x1x64xf32> to vector<1x64xf32>
    %101 = vector.broadcast %100 : vector<1x64xf32> to vector<16x64xf32>
    %102 = arith.addf %98, %101 : vector<16x64xf32>
    %cst_44 = arith.constant 0.000000e+00 : f32
    %103 = vector.broadcast %cst_44 : f32 to vector<16x64xf32>
    %104 = arith.maximumf %102, %103 : vector<16x64xf32>
    %105 = arith.truncf %104 : vector<16x64xf32> to vector<16x64xbf16>
    %c0_45 = arith.constant 0 : index
    %c0_46 = arith.constant 0 : index
    %c0_47 = arith.constant 0 : index
    %106 = vector.load %arg11[%c0_45, %c0_46, %c0_47] : memref<1x64x32xbf16, #tpu.memory_space<vmem>>, vector<1x64x32xbf16>
    %107 = vector.shape_cast %106 : vector<1x64x32xbf16> to vector<64x32xbf16>
    %cst_48 = arith.constant dense<0.000000e+00> : vector<16x32xf32>
    %108 = tpu.matmul %105, %107, %cst_48 {dimension_numbers = #tpu.dot_dimension_numbers<[1], [0], [0], [1], [0, 0, 1, 1], [], []>} : vector<16x64xbf16>, vector<64x32xbf16>, vector<16x32xf32> -> vector<16x32xf32>
    %c0_49 = arith.constant 0 : index
    %c0_50 = arith.constant 0 : index
    %c0_51 = arith.constant 0 : index
    %109 = vector.load %arg12[%c0_49, %c0_50, %c0_51] : memref<1x1x32xf32, #tpu.memory_space<vmem>>, vector<1x1x32xf32>
    %110 = vector.shape_cast %109 : vector<1x1x32xf32> to vector<1x32xf32>
    %111 = vector.broadcast %110 : vector<1x32xf32> to vector<16x32xf32>
    %112 = arith.addf %108, %111 : vector<16x32xf32>
    %113 = arith.addf %94, %112 : vector<16x32xf32>
    %c0_52 = arith.constant 0 : index
    %c0_53 = arith.constant 0 : index
    %c0_54 = arith.constant 0 : index
    %114 = vector.load %arg13[%c0_52, %c0_53, %c0_54] : memref<1x1x32xf32, #tpu.memory_space<vmem>>, vector<1x1x32xf32>
    %115 = vector.shape_cast %114 : vector<1x1x32xf32> to vector<1x32xf32>
    %c0_55 = arith.constant 0 : index
    %c0_56 = arith.constant 0 : index
    %c0_57 = arith.constant 0 : index
    %116 = vector.load %arg14[%c0_55, %c0_56, %c0_57] : memref<1x1x32xf32, #tpu.memory_space<vmem>>, vector<1x1x32xf32>
    %117 = vector.shape_cast %116 : vector<1x1x32xf32> to vector<1x32xf32>
    %cst_58 = arith.constant dense<0.000000e+00> : vector<16xf32>
    %118 = vector.multi_reduction <add>, %113, %cst_58 [1] : vector<16x32xf32> to vector<16xf32>
    %119 = vector.shape_cast %118 : vector<16xf32> to vector<16x1xf32>
    %cst_59 = arith.constant 3.200000e+01 : f32
    %120 = vector.broadcast %cst_59 : f32 to vector<16x1xf32>
    %121 = arith.divf %119, %120 : vector<16x1xf32>
    %122 = vector.broadcast %121 : vector<16x1xf32> to vector<16x32xf32>
    %123 = arith.subf %113, %122 : vector<16x32xf32>
    %124 = arith.mulf %123, %123 : vector<16x32xf32>
    %cst_60 = arith.constant dense<0.000000e+00> : vector<16xf32>
    %125 = vector.multi_reduction <add>, %124, %cst_60 [1] : vector<16x32xf32> to vector<16xf32>
    %126 = vector.shape_cast %125 : vector<16xf32> to vector<16x1xf32>
    %cst_61 = arith.constant 3.200000e+01 : f32
    %127 = vector.broadcast %cst_61 : f32 to vector<16x1xf32>
    %128 = arith.divf %126, %127 : vector<16x1xf32>
    %129 = vector.broadcast %121 : vector<16x1xf32> to vector<16x32xf32>
    %130 = arith.subf %113, %129 : vector<16x32xf32>
    %cst_62 = arith.constant 9.99999974E-6 : f32
    %131 = vector.broadcast %cst_62 : f32 to vector<16x1xf32>
    %132 = arith.addf %128, %131 : vector<16x1xf32>
    %133 = math.rsqrt %132 : vector<16x1xf32>
    %134 = vector.broadcast %133 : vector<16x1xf32> to vector<16x32xf32>
    %135 = arith.mulf %130, %134 : vector<16x32xf32>
    %136 = vector.broadcast %115 : vector<1x32xf32> to vector<16x32xf32>
    %137 = arith.mulf %135, %136 : vector<16x32xf32>
    %138 = vector.broadcast %117 : vector<1x32xf32> to vector<16x32xf32>
    %139 = arith.addf %137, %138 : vector<16x32xf32>
    %140 = vector.shape_cast %139 : vector<16x32xf32> to vector<2x8x32xf32>
    %c0_63 = arith.constant 0 : index
    %c0_64 = arith.constant 0 : index
    %c0_65 = arith.constant 0 : index
    %141 = vector.load %arg15[%c0_63, %c0_64, %c0_65] : memref<2x8x32xf32, #tpu.memory_space<vmem>>, vector<2x8x32xf32>
    tpu.vector_store %arg15[%c0_63, %c0_64, %c0_65], %140 {strides = array<i32>} : memref<2x8x32xf32, #tpu.memory_space<vmem>>, vector<2x8x32xf32>,
    return
  }
  func.func @transform_0(%arg0: i32, %arg1: i32) -> (i32, i32, i32) {
    %c0_i32 = arith.constant 0 : i32
    %c0_i32_0 = arith.constant 0 : i32
    %c0_i32_1 = arith.constant 0 : i32
    return %arg0, %c0_i32, %c0_i32_0 : i32, i32, i32
  }
  func.func @transform_1(%arg0: i32, %arg1: i32) -> (i32, i32) {
    %c0_i32 = arith.constant 0 : i32
    %c0_i32_0 = arith.constant 0 : i32
    %c0_i32_1 = arith.constant 0 : i32
    return %c0_i32, %c0_i32_0 : i32, i32
  }
  func.func @transform_2(%arg0: i32, %arg1: i32) -> (i32, i32, i32) {
    %c0_i32 = arith.constant 0 : i32
    %c0_i32_0 = arith.constant 0 : i32
    %c0_i32_1 = arith.constant 0 : i32
    return %arg0, %c0_i32, %c0_i32_0 : i32, i32, i32
  }
  func.func @transform_3(%arg0: i32, %arg1: i32) -> (i32, i32, i32) {
    %c0_i32 = arith.constant 0 : i32
    %c0_i32_0 = arith.constant 0 : i32
    %c0_i32_1 = arith.constant 0 : i32
    return %arg1, %c0_i32, %c0_i32_0 : i32, i32, i32
  }
  func.func @transform_4(%arg0: i32, %arg1: i32) -> (i32, i32, i32) {
    %c0_i32 = arith.constant 0 : i32
    %c0_i32_0 = arith.constant 0 : i32
    %c0_i32_1 = arith.constant 0 : i32
    return %arg1, %c0_i32, %c0_i32_0 : i32, i32, i32
  }
  func.func @transform_5(%arg0: i32, %arg1: i32) -> (i32, i32, i32) {
    %c0_i32 = arith.constant 0 : i32
    %c0_i32_0 = arith.constant 0 : i32
    %c0_i32_1 = arith.constant 0 : i32
    return %arg1, %c0_i32, %c0_i32_0 : i32, i32, i32
  }
  func.func @transform_6(%arg0: i32, %arg1: i32) -> (i32, i32, i32) {
    %c0_i32 = arith.constant 0 : i32
    %c0_i32_0 = arith.constant 0 : i32
    %c0_i32_1 = arith.constant 0 : i32
    return %arg1, %c0_i32, %c0_i32_0 : i32, i32, i32
  }
  func.func @transform_7(%arg0: i32, %arg1: i32) -> (i32, i32, i32) {
    %c0_i32 = arith.constant 0 : i32
    %c0_i32_0 = arith.constant 0 : i32
    %c0_i32_1 = arith.constant 0 : i32
    return %arg1, %c0_i32, %c0_i32_0 : i32, i32, i32
  }
  func.func @transform_8(%arg0: i32, %arg1: i32) -> (i32, i32, i32) {
    %c0_i32 = arith.constant 0 : i32
    %c0_i32_0 = arith.constant 0 : i32
    %c0_i32_1 = arith.constant 0 : i32
    return %arg1, %c0_i32, %c0_i32_0 : i32, i32, i32
  }
  func.func @transform_9(%arg0: i32, %arg1: i32) -> (i32, i32, i32) {
    %c0_i32 = arith.constant 0 : i32
    %c0_i32_0 = arith.constant 0 : i32
    %c0_i32_1 = arith.constant 0 : i32
    return %arg1, %c0_i32, %c0_i32_0 : i32, i32, i32
  }
  func.func @transform_10(%arg0: i32, %arg1: i32) -> (i32, i32, i32) {
    %c0_i32 = arith.constant 0 : i32
    %c0_i32_0 = arith.constant 0 : i32
    %c0_i32_1 = arith.constant 0 : i32
    return %arg1, %c0_i32, %c0_i32_0 : i32, i32, i32
  }
  func.func @transform_11(%arg0: i32, %arg1: i32) -> (i32, i32, i32) {
    %c0_i32 = arith.constant 0 : i32
    %c0_i32_0 = arith.constant 0 : i32
    %c0_i32_1 = arith.constant 0 : i32
    return %arg1, %c0_i32, %c0_i32_0 : i32, i32, i32
  }
  func.func @transform_12(%arg0: i32, %arg1: i32) -> (i32, i32, i32) {
    %c0_i32 = arith.constant 0 : i32
    %c0_i32_0 = arith.constant 0 : i32
    %c0_i32_1 = arith.constant 0 : i32
    return %arg1, %c0_i32, %c0_i32_0 : i32, i32, i32
  }
  func.func @transform_13(%arg0: i32, %arg1: i32) -> (i32, i32, i32) {
    %c0_i32 = arith.constant 0 : i32
    %c0_i32_0 = arith.constant 0 : i32
    %c0_i32_1 = arith.constant 0 : i32
    return %arg0, %c0_i32, %c0_i32_0 : i32, i32, i32
  }
}

</mosaic_0001>

<bundles_post_ra>
// kernel: tpu_custom_call.1
= control target key start
LH: loop header
LB: loop body
LE: loop exit
PB: predicated region body
PF: predicated region fallthrough
CT: control target
= control target key end

     0   :  { %s2953_s0 = inlined_call_operand.vmem [shape: f32[4,8,32], index: 0, kind: input, shape index: {}]   ;;  %s2954_s1 = inlined_call_operand.hbm [shape: f32[8,32], index: 1, kind: input, shape index: {}]   ;;  %s2955_s2 = inlined_call_operand.hbm [shape: f32[4,1,8], index: 2, kind: input, shape index: {}]   ;;  %s2956_s3 = inlined_call_operand.vmem [shape: bf16[2,32,96], index: 3, kind: input, shape index: {}]   ;;  %s2957_s4 = inlined_call_operand.vmem [shape: bf16[2,32,32], index: 4, kind: input, shape index: {}]   ;;  %s2958_s5 = inlined_call_operand.vmem [shape: f32[2,1,32], index: 5, kind: input, shape index: {}]   ;;  %s2959_s6 = inlined_call_operand.vmem [shape: f32[2,1,32], index: 6, kind: input, shape index: {}]   ;;  %s2960_s7 = inlined_call_operand.hbm [shape: bf16[2,32,64], index: 7, kind: input, shape index: {}]   ;;  %s2961_s8 = inlined_call_operand.vmem [shape: f32[2,1,64], index: 8, kind: input, shape index: {}]   ;;  %s2962_s9 = inlined_call_operand.vmem [shape: bf16[2,64,32], index: 9, kind: input, shape index: {}]   ;;  %s2963_s10 = inlined_call_operand.vmem [shape: f32[2,1,32], index: 10, kind: input, shape index: {}]   ;;  %s2964_s11 = inlined_call_operand.vmem [shape: f32[2,1,32], index: 11, kind: input, shape index: {}]   ;;  %s2965_s12 = inlined_call_operand.vmem [shape: f32[2,1,32], index: 12, kind: input, shape index: {}]   ;;  %s2966_s13 = inlined_call_operand.hbm [shape: f32[4,8,32], index: 13, kind: output, shape index: {}]  }
   0x1   :  { %2985 = sst [smem:[#allocation27_spill]] %s2953_s0 }
   0x2   :  { %2986 = sst [smem:[#allocation28_spill]] %s2954_s1 }
   0x3   :  { %2987 = sst [smem:[#allocation29_spill]] %s2955_s2 }
   0x4   :  { %2988 = sst [smem:[#allocation30_spill]] %s2956_s3 }
   0x5   :  { %2989 = sst [smem:[#allocation31_spill]] %s2957_s4 }
   0x6   :  { %2990 = sst [smem:[#allocation32_spill]] %s2958_s5 }
   0x7   :  { %2991 = sst [smem:[#allocation33_spill]] %s2959_s6 }
   0x8   :  { %2992 = sst [smem:[#allocation34_spill]] %s2960_s7 }
   0x9   :  { %2993 = sst [smem:[#allocation35_spill]] %s2961_s8 }
   0xa   :  { %2994 = sst [smem:[#allocation36_spill]] %s2962_s9 }
   0xb   :  { %2995 = sst [smem:[#allocation37_spill]] %s2963_s10 }
   0xc   :  { %2996 = sst [smem:[#allocation38_spill]] %s2964_s11 }
   0xd   :  { %2997 = sst [smem:[#allocation39_spill]] %s2965_s12 }
   0xe   :  { %2998 = sst [smem:[#allocation40_spill]] %s2966_s13 }
   0xf   :  { %18 = vsyncpa [#allocation3], 0 }
  0x10   :  { %19 = vsyncpa [#allocation6], 0 }
  0x11   :  { %21 = vsyncpa [#allocation6 + $0x1], 0 }
  0x12   :  { %22 = vsyncpa [#allocation4], 0 }
  0x13   :  { %24 = vsyncpa [#allocation4 + $0x1], 0  ;;  %s2445_s25 = smov 0   ;;  %s2447_s26 = smov 0  }
  0x14   :  { %s2449_s27 = smov 0   ;;  %s2451_s28 = smov 0  }
  0x15   :  { %s2453_s29 = smov 0   ;;  %s2455_s30 = smov 0  }
  0x16   :  { %s2457_s14 = smov 0   ;;  %s2459_s15 = smov 0  }
  0x17   :  { %s2461_s16 = smov 0   ;;  %s2463_s17 = smov 0  }
  0x18   :  { %s2465_s18 = smov 0  }
  0x19 LB: > { %2999 = sst [smem:[#allocation13_spill]] %s2318_s26  ;;  %p103_p0 = scmp.ne.s32.totalorder %s2334_s30, %s2330_s29  ;;  %s2354_s18 = sphi %s2465_s18, %s30_s18   ;;  %s2350_s17 = sphi %s2463_s17, %s3067_s17   ;;  %s2346_s16 = sphi %s2461_s16, %s3066_s16   ;;  %s2342_s15 = sphi %s2459_s15, %s3065_s15   ;;  %s2338_s14 = sphi %s2457_s14, %s3064_s14   ;;  %s2334_s30 = sphi %s2455_s30, %s3063_s30   ;;  %s2330_s29 = sphi %s2453_s29, %s3062_s29   ;;  %s2326_s28 = sphi %s2451_s28, %s3061_s28   ;;  %s2322_s27 = sphi %s2449_s27, %s3060_s27   ;;  %s2318_s26 = sphi %s2447_s26, %s3059_s26   ;;  %s2314_s25 = sphi %s2445_s25, %s3058_s25  }
  0x1a   : > { %3000 = sst [smem:[#allocation14_spill]] %s2322_s27  ;;  %p104_p1 = scmp.eq.s32.totalorder %s2354_s18, 0 }
  0x1b   : > { %3001 = sst [smem:[#allocation15_spill]] %s2326_s28  ;;  %p2968_p2 = scmp.lt.s32.totalorder %s2354_s18, 4 }
  0x1c   : > { %3002 = sst [smem:[#allocation16_spill]] %s2330_s29  ;;  %p105_p3 = por %p104_p1, %p103_p0 }
  0x1d   : > { %3003 = sst [smem:[#allocation17_spill]] %s2334_s30  ;;  %s439_s21 = sand.u32 1, %s2354_s18  }
  0x1e   : > { %3004 = sst [smem:[#allocation18_spill]] %s2346_s16  ;;  %s441_s22 = sand.u32 1, %s2334_s30  }
  0x1f   : > { %3005 = sst [smem:[#allocation19_spill]] %s2350_s17  ;;  %s1795_s23 = sshll.u32 %s441_s22, 1 }
  0x20   : > { %3006 = sst [smem:[#allocation20_spill]] %s2354_s18  ;;  %s1850_s24 = sshll.u32 %s2350_s17, 5 }
  0x21   : > { %s3007_s2 = sld [smem:[#allocation29_spill]]  ;;  %s443_s10 = scalar_lea.vmem [#allocation5], %s1795_s23 }
  0x22   : > { %s450_s9 = sshll.u32 %s443_s10, 4  ;;  %p2519_p4 = pnand %p2968_p2, %p105_p3  ;;  %s451_s9 = int_to_ptr.vmem [resolvable:$true] %s450_s9 }
  0x23   : > { %s2523_s20 = scalar_lea.sflag [#allocation6], %s439_s21  ;;  %s2157_s8 = scalar_lea.vmem %s451_s9, 32 }
  0x24   : > { %p2146_p5 = pneg %p2519_p4  ;;  %p2158_p6 = scmp.ne.s32.totalorder %s451_s9, %s2157_s8 }
  0x25   : > { %s2356_s22 = smov [#allocation5]  }
  0x26   : > { %p2160_p7 = pnand %p2158_p6, %p2146_p5  ;;  %s2162_s12 = sshll.u32 %s2356_s22, 4  ;;  %s2163_s12 = int_to_ptr.vmem [resolvable:$false] %s2162_s12 }
  0x27   : > { %s449_s11 = scalar_lea.hbm %s3007_s2, %s1850_s24  ;;  %s2164_s13 = scalar_lea.vmem %s2163_s12, 64 }
  0x28   : > { %p2161_p8 = pneg %p2160_p7  ;;  %p2165_p9 = scmp.lt.s32.totalorder %s451_s9, %s2163_s12 }
  0x29   : > { %p2166_p10 = scmp.lt.s32.totalorder %s2164_s13, %s2157_s8 }
  0x2b   : > { %p2167_p11 = por %p2166_p10, %p2165_p9 }
  0x2d   : > { %p2168_p12 = pnand %p2167_p11, %p2161_p8 }
  0x2f   : > { %2171 = shalt.err (!%p2168_p12)
}
  0x30   : > { %s2357_s10 = smov 16   ;;  %s2358_s8 = smov 1  }
  0x31   : > { %1989 = dma.hbm_to_vmem [thread:$0]  (!%p2519_p4), %s449_s11, 32, %s451_s9, %s2523_s20, %s2357_s10, %s2357_s10, %s2358_s8  }
  0x32   : > { %s2531_s21 = sadd.s32 4294967295, %s2354_s18   ;;  %s1791_s23 = sadd.s32 4294967294, %s2354_s18  }
  0x33   : > { %p109_p13 = scmp.ne.s32.totalorder %s2330_s29, %s2326_s28  ;;  %p2971_p3 = scmp.eq.s32.totalorder %s2531_s21, 0 }
  0x34   : > { %p233_p5 = scmp.ne.s32.totalorder %s2322_s27, %s2318_s26  ;;  %p239_p4 = scmp.ne.s32.totalorder %s2318_s26, %s2314_s25 }
  0x35   : > { %p2542_p6 = por %p2971_p3, %p109_p13  ;;  %p393_p8 = scmp.eq.s32.totalorder %s2531_s21, 3 }
  0x36   : > { %p235_p7 = por %p233_p5, %p104_p1  ;;  %p2553_p9 = por %p239_p4, %p2971_p3 }
  0x37   : > { %s3009_s22 = scalar_select %p2542_p6, 1, 0 }
  0x38   : > { %p399_p10 = scmp.eq.s32.totalorder %s1791_s23, 3  ;;  %p2560_p11 = por %p393_p8, %p103_p0 }
  0x39   : > { %p1792_p12 = scmp.ge.s32.totalorder %s2354_s18, 1  ;;  %p406_p6 = scmp.lt.s32.totalorder %s2354_s18, 5 }
  0x3a   : > { %s3011_s11 = scalar_select %p2560_p11, 1, 0 }
  0x3b   : > { %p2565_p2 = por %p399_p10, %p109_p13  ;;  %p2570_p1 = pnand %p1792_p12, %p406_p6 }
  0x3c   : > { %3012 = sst [smem:[#allocation21_spill]] %s3011_s11  ;;  %s2359_s12 = smov [#allocation2]  }
  0x3d   : > { %s3013_s19 = scalar_select %p2565_p2, 1, 0 }
  0x3e   : > { %s419_s13 = sshll.u32 %s2359_s12, 4  ;;  %p3016_p5 = scmp.lt.s32.totalorder %s2354_s18, 4  ;;  %s420_s13 = int_to_ptr.vmem [resolvable:$true] %s419_s13 }
  0x3f   : > { %3014 = sst [smem:[#allocation22_spill]] %s3013_s19  ;;  %p1982_p0 = pneg %p2570_p1 }
  0x40   : > { %p2576_p4 = pnand %p3016_p5, %p235_p7  ;;  %s39_s23 = sadd.s32 1, %s2346_s16 }
  0x41   : > { %p2584_p13 = pnand %p1982_p0, %p2971_p3  ;;  %p2589_p6 = scmp.ge.s32.totalorder %s39_s23, 2 }
  0x42   : > { %s490_s12 = sand.u32 1, %s2322_s27   ;;  %s2183_s19 = scalar_lea.vmem %s420_s13, 128 }
  0x43   : > { %s1798_s2 = sshll.u32 %s490_s12, 4  ;;  %p2174_p7 = pneg %p2584_p13 }
  0x44   : > { %p2184_p8 = scmp.ne.s32.totalorder %s420_s13, %s2183_s19  ;;  %p2191_p5 = scmp.lt.s32.totalorder %s420_s13, %s420_s13 }
  0x45   : > { %p2192_p2 = scmp.lt.s32.totalorder %s2183_s19, %s2183_s19 }
  0x46   : > { %p2186_p10 = pnand %p2184_p8, %p2174_p7 }
  0x47   : > { %p2193_p0 = por %p2192_p2, %p2191_p5 }
  0x48   : > { %p2187_p12 = pneg %p2186_p10 }
  0x4a   : > { %p2194_p3 = pnand %p2193_p0, %p2187_p12 }
  0x4c   : > { %2197 = shalt.err (!%p2194_p3)
}
  0x4d   : > { %s3020_s1 = sld [smem:[#allocation28_spill]]  ;;  %s3069_s23 = smov (%p2589_p6, %s39_s23), 0 }
  0x4e   : > { %3021 = sst [smem:[#allocation23_spill]] %s3069_s23  ;;  %s3022_s19 = sadd.s32 1, %s2350_s17 }
  0x4f   : > { %s3071_s19 = smov (!%p2589_p6, %s3022_s19), %s2350_s17  ;;  %s223_s28 = ssub.s32 %s2346_s16, %s3069_s23 }
  0x50   : > { %p44_p2 = scmp.ge.s32.totalorder %s3071_s19, 2  ;;  %p224_p3 = scmp.eq.s32.totalorder %s223_s28, 0 }
  0x51   : > { %s1851_s18 = sshll.u32 %s2346_s16, 8  ;;  %s492_s8 = scalar_lea.vmem [#allocation7], %s1798_s2 }
  0x52   : > { %s499_s12 = sshll.u32 %s492_s8, 4  ;;  %s3073_s19 = smov (%p44_p2, %s3071_s19), 0  ;;  %s500_s12 = int_to_ptr.vmem [resolvable:$true] %s499_s12 }
  0x53   : > { %1985 = dma.hbm_to_vmem [thread:$0]  (!%p2584_p13), %s3020_s1, 128, %s420_s13, [#allocation3]  }
  0x54   : > { %3023 = sst [smem:[#allocation24_spill]] %s3073_s19  ;;  %s3024_s11 = sadd.s32 1, %s2322_s27 }
  0x55   : > { %s2618_s6 = scalar_select %p224_p3, %s2322_s27, %s3024_s11  }
  0x56   : > { %s93_s13 = ssub.s32 %s2350_s17, %s3073_s19  ;;  %s3026_s7 = sld [smem:[#allocation34_spill]] }
  0x57   : > { %3025 = sst [smem:[#allocation25_spill]] %s2618_s6  ;;  %p94_p13 = scmp.eq.s32.totalorder %s93_s13, 0 }
  0x58   : > { %s3027_s24 = sadd.s32 1, %s2334_s30  ;;  %p2200_p6 = pneg %p2576_p4 }
  0x59   : > { %s2628_s23 = scalar_select %p94_p13, %s2334_s30, %s3027_s24  }
  0x5a   : > { %s2211_s2 = scalar_lea.vmem %s500_s12, 256  ;;  %s2360_s28 = smov [#allocation7]  }
  0x5b   : > { %3028 = sst [smem:[#allocation26_spill]] %s2628_s23  ;;  %p2212_p7 = scmp.ne.s32.totalorder %s500_s12, %s2211_s2 }
  0x5c   : > { %s498_s4 = scalar_lea.hbm %s3026_s7, %s1851_s18  ;;  %s2216_s8 = sshll.u32 %s2360_s28, 4  ;;  %s2217_s8 = int_to_ptr.vmem [resolvable:$false] %s2216_s8 }
  0x5d   : > { %p2214_p8 = pnand %p2212_p7, %p2200_p6  ;;  %s2218_s11 = scalar_lea.vmem %s2217_s8, 512 }
  0x5e   : > { %p2219_p12 = scmp.lt.s32.totalorder %s500_s12, %s2217_s8  ;;  %p2220_p5 = scmp.lt.s32.totalorder %s2218_s11, %s2211_s2 }
  0x5f   : > { %p2215_p10 = pneg %p2214_p8 }
  0x60   : > { %p2221_p0 = por %p2220_p5, %p2219_p12 }
  0x62   : > { %p2222_p2 = pnand %p2221_p0, %p2215_p10 }
  0x64   : > { %2225 = shalt.err (!%p2222_p2)
}
  0x65   : > { %s2361_s1 = smov 64   ;;  %s2362_s5 = smov 4  }
  0x66   : > { %1992 = dma.hbm_to_vmem [thread:$0]  (!%p2576_p4), %s498_s4, 256, %s500_s12, %s2523_s20, %s2361_s1, %s2361_s1, %s2362_s5  }
  0x67   : > { %543 = sbr.rel (%p2570_p1) target bundleno = 3049 (0xbe9), region = 72  ;;  %p3029_p3 = scmp.eq.s32.totalorder (!%p2570_p1), %s2531_s21, 0 }
  0x6c   : > { %2297 = dma.done.wait (%p3029_p3), [#allocation3], 128   ;;  %p3030_p13 = pmov %p3029_p3 }
  0x6d   : > { %s549_s18 = sand.u32 1, %s2531_s21   ;;  %s2643_s13 = sand.u32 1, %s2330_s29  }
  0x6e   : > { %2299 = vsyncadd (%p3030_p13), [#allocation3], 4294967168  ;;  %s1803_s24 = sshll.u32 %s2643_s13, 1  ;;  %s550_s2 = scalar_lea.sflag [#allocation6], %s549_s18 }
  0x6f   : > { %s2646_s10 = scalar_lea.vmem [#allocation5], %s1803_s24  ;;  %p3031_p4 = scmp.ne.s32.totalorder %s3009_s22, 0 }
  0x71   : > { %2301 = dma.done.wait (%p3031_p4), %s550_s2, 32  }
  0x72   : > { %2303 = vsyncadd (%p3031_p4), %s550_s2, 4294967264  ;;  %s560_s4 = sand.u32 1, %s2318_s26  }
  0x73   : > { %s2653_s20 = sshll.u32 %s560_s4, 4 }
  0x74   : > { %2305 = dma.done.wait (%p2553_p9), %s550_s2, 256  }
  0x75   : > { %2307 = vsyncadd (%p2553_p9), %s550_s2, 4294967040  ;;  %s1805_s21 = sshll.u32 %s2643_s13, 4  ;;  %s1806_s12 = sshll.u32 %s2342_s15, 1 }
  0x76   : > { %p649_p1 = scmp.lt.s32.totalorder %s1806_s12, 3  ;;  %p655_p6 = scmp.lt.s32.totalorder %s2338_s14, 1 }
  0x77   : > { %s3032_s0 = sld [smem:[#allocation27_spill]]  ;;  %s2708_s28 = scalar_lea.vmem [#allocation8], %s1805_s21 }
  0x78   : > { %s3075_s12 = smov (!%p649_p1, %s1806_s12), 3  ;;  %s3033_s3 = sld [smem:[#allocation30_spill]] }
  0x79   : > { %s2664_s22 = scalar_select %p655_p6, %s2338_s14, 1 }
  0x7a   : > { %s1807_s9 = sshll.u32 %s3075_s12, 3  ;;  %s3034_s25 = sld [smem:[#allocation31_spill]] }
  0x7b   : > { %s1852_s1 = sshll.u32 %s2664_s22, 4  ;;  %s3037_s8 = sld [smem:[#allocation35_spill]] }
  0x7c   : > { %s1854_s27 = sshll.u32 %s2664_s22, 5  ;;  %s3039_s2 = sld [smem:[#allocation37_spill]] }
  0x7d   : > { %s652_s11 = scalar_lea.vmem %s3032_s0, %s1807_s9  ;;  %s3040_s19 = sld [smem:[#allocation38_spill]] }
  0x7e   : > { %s659_s24 = scalar_lea.vmem %s3033_s3, %s1852_s1  ;;  %s3038_s3 = sld [smem:[#allocation36_spill]] }
  0x7f   : > { %s3041_s12 = sld [smem:[#allocation39_spill]]  ;;  %p1814_p9 = scmp.ne.s32.totalorder %s2338_s14, 0 }
  0x80   : > { %s2676_s7 = scalar_lea.vmem %s3034_s25, %s1852_s1 }
  0x81   : > { %s673_s0 = scalar_lea.vmem %s3037_s8, %s2664_s22  ;;  %693 = sbr.rel (%p1814_p9) target bundleno = 140 (0x8c), region = 88 }
  0x82   : > { %s681_s4 = scalar_lea.vmem %s3039_s2, %s2664_s22 }
  0x83   : > { %s684_s23 = scalar_lea.vmem %s3040_s19, %s2664_s22 }
  0x84   : > { %s2694_s26 = scalar_lea.vmem %s3038_s3, %s1854_s27 }
  0x85   : > { %s687_s6 = scalar_lea.vmem %s3041_s12, %s2664_s22 }
  0x86   : > { %v694_v0 = vld [vmem:[%s652_s11] sm:$0xff]  ;;  %v695_v2 = vld [vmem:[%s652_s11 + $0x8] sm:$0xff]  ;;  %vm701_vm0 = vcmask 261120  }
  0x87   : > { %v698_v1 = vld [vmem:[#allocation2] sm:$0xff]  ;;  %v696_v3 = vmul.f32 5.656854, %v694_v0  ;;  %v697_v4 = vmul.f32 5.656854, %v695_v2 }
  0x89   : > { %v699_v5 = vadd.f32 %v698_v1, %v696_v3  ;;  %v700_v6 = vadd.f32 %v698_v1, %v697_v4 }
  0x8b   : > { %702 = vst.msk [vmem:[%s2708_s28] sm:$0xff] %vm701_vm0, %v699_v5  ;;  %703 = vst.msk [vmem:[%s2708_s28 + $0x8] sm:$0xff] %vm701_vm0, %v700_v6 }
  0x8c PF: > { %v2110_v7 = vld [vmem:[%s659_s24 + $0x8] sm:$0xff]   ;;  %v2363_v8 = vmov 0.0   ;;  %v2111_v9 = vld [vmem:[%s659_s24] sm:$0xff]   ;;  %vm2364_vm1 = vmmov 0   ;;  %vm723_vm2 = vcmask 261120   ;;  %s2365_s3 = smov 96   ;;  %v879_v23 = vlaneseq }
  0x8d   : > { %1888 = vmatprep.subr.bf16.mxu0 %v2363_v8  ;;  %1896 = vmatprep.subr.bf16.mxu1 %v2363_v8  ;;  %vm780_vm3 = vcmask 130048   ;;  %v774_v24 = vld [vmem:[%s2646_s10] sm:$0x1]  ;;  %v775_v26 = vld [vmem:[%s2646_s10 + $0x1] sm:$0x1]  ;;  %v2366_v28 = vmov 0  }
  0x8e   : > { %1889 = vmatpush3.bf16.msra.mxu0 %v2110_v7  ;;  %1892 = vmatprep.mubr.msk.bf16.mxu0 %vm2364_vm1, %v2363_v8  ;;  %v880_v25 = vshrl.u32 %v879_v23, 7  ;;  %vm776_vm4 = vcmp.gt.f32.partialorder %v774_v24, 0.5  ;;  %vm777_vm5 = vcmp.gt.f32.partialorder %v775_v26, 0.5  ;;  %vm891_vm7 = vcmask 64512   ;;  %s2367_s27 = smov 64   ;;  %s2368_s14 = smov 80  }
  0x8f   : > { %1890 = vmatprep.subr.bf16.mxu0 %v2363_v8  ;;  %1898 = vmatprep.mubr.msk.bf16.mxu1 %vm2364_vm1, %v2363_v8  ;;  %v877_v29 = vsel %vm776_vm4, 1, %v2366_v28  ;;  %v878_v31 = vsel %vm777_vm5, 1, %v2366_v28  ;;  %vm921_vm9 = vcmask 1043456   ;;  %s2369_s10 = smov 112   ;;  %s2370_s21 = smov 48   ;;  %vm1465_vm10 = vcmask 523264  }
  0x90   : > { %v881_v27 = vsub.s32 0, %v880_v25  ;;  %s2371_s11 = smov 16   ;;  %s3044_s8 = sld [smem:[#allocation32_spill]] }
  0x91   : > { %s3046_s1 = sld [smem:[#allocation33_spill]] }
  0x92   : > { %v2718_v10 = vld [vmem:[%s2708_s28] sm:$0xff]  ;;  %v2721_v11 = vld [vmem:[%s2708_s28 + $0x8] sm:$0xff]  ;;  %1891 = vmatpush3.bf16.msra.mxu0 %v2111_v9  ;;  %v2752_v30 = vrot.slane %v877_v29, %v881_v27  ;;  %v2755_v33 = vrot.slane %v878_v31, %v881_v27 }
  0x93   : > { %v706_v12 = vpack.c.bf16 %v2721_v11, %v2718_v10  ;;  %1902 = vmatprep.subr.bf16.mxu0 %v2363_v8 }
  0x94   : > { %vm887_vm6 = vcmp.eq.s32.totalorder %v2752_v30, 1  ;;  %vm888_vm8 = vcmp.eq.s32.totalorder %v2755_v33, 1 }
  0x95   : > { %1893 = vmatmul.mubr.msk.bf16.vlgmr.msra.gmra.mxu0 %vm723_vm2, %v706_v12 }
  0x96   : > { %1904 = vmatprep.mubr.msk.bf16.mxu0 %vm2364_vm1, %v2363_v8  ;;  %s3045_s5 = scalar_lea.vmem %s3044_s8, %s2664_s22 }
  0x97   : > { %s3047_s2 = scalar_lea.vmem %s3046_s1, %s2664_s22 }
 0x155   : > { %v761_v13 = vpop.f32.mrf.mxu0 }
 0x156   : > { %v2732_v14 = vpack.c.bf16 %v761_v13, %v761_v13 }
 0x157   : > { %v1894_v15 = vpop.f32.mrf.mxu0 }
 0x158   : > { %778 = vrot.lane.b32.xlu0 %v2732_v14, %s2365_s3 }
 0x159   : > { %v764_v16 = vpop.f32.mrf.mxu0 }
 0x15a   : > { %v2735_v17 = vpack.c.bf16 %v764_v16, %v764_v16 }
 0x15b   : > { %v1895_v18 = vpop.f32.mrf.mxu0 }
 0x15c   : > { %827 = vrot.lane.b32.xlu0 %v2735_v17, %s2365_s3 }
 0x1ca   : > { %v779_v19 = vpop.permute.xlu0 %778 }
 0x1cb   : > { %v785_v20 = vsel %vm780_vm3, %v779_v19, 0 }
 0x1cc   : > { %1897 = vmatpush3.bf16.xpose.msra.mxu1 %v785_v20 }
 0x1cd   : > { %1908 = vmatprep.subr.bf16.mxu1 %v2363_v8 }
 0x1ce   : > { %v828_v21 = vpop.permute.xlu0 %827 }
 0x1cf   : > { %v833_v22 = vsel %vm780_vm3, %v828_v21, 0 }
 0x1d0   : > { %1903 = vmatpush3.bf16.xpose.msra.mxu0 %v833_v22 }
 0x1d1   : > { %1914 = vmatprep.subr.bf16.mxu0 %v2363_v8 }
 0x1d3   : > { %1899 = vmatmul.mubr.msk.bf16.vlgmr.msra.gmra.mxu1 %vm780_vm3, %v2732_v14 }
 0x1d4   : > { %1910 = vmatprep.mubr.msk.bf16.mxu1 %vm2364_vm1, %v2363_v8 }
 0x1d7   : > { %1905 = vmatmul.mubr.msk.bf16.vlgmr.msra.gmra.mxu0 %vm780_vm3, %v2735_v17 }
 0x1d8   : > { %1916 = vmatprep.mubr.msk.bf16.mxu0 %vm2364_vm1, %v2363_v8 }
 0x293   : > { %v821_v32 = vpop.f32.mrf.mxu1 }
 0x294   : > { %v875_v34 = vmul.f32 0.25, %v821_v32 }
 0x295   : > { %v1900_v35 = vpop.f32.mrf.mxu1 }
 0x296   : > { %v889_v36 = vsel %vm887_vm6, %v875_v34, -1000000.0 }
 0x297   : > { %v824_v37 = vpop.f32.mrf.mxu1  ;;  %v869_v38 = vpop.f32.mrf.mxu0  ;;  %v892_v39 = vsel %vm891_vm7, %v889_v36, -inf }
 0x298   : > { %v876_v40 = vmul.f32 0.25, %v869_v38  ;;  %893 = vmax.xlane.f32.xlu1 %v892_v39 }
 0x299   : > { %v1901_v41 = vpop.f32.mrf.mxu1  ;;  %v1906_v42 = vpop.f32.mrf.mxu0 }
 0x29a   : > { %v890_v43 = vsel %vm888_vm8, %v876_v40, -1000000.0 }
 0x29b   : > { %v872_v44 = vpop.f32.mrf.mxu0  ;;  %v895_v45 = vsel %vm891_vm7, %v890_v43, -inf }
 0x29c   : > { %896 = vmax.xlane.f32.xlu1 %v895_v45 }
 0x29d   : > { %v1907_v46 = vpop.f32.mrf.mxu0 }
 0x2ad   : > { %916 = vrot.lane.b32.xlu1 %v2732_v14, %s2367_s27 }
 0x2b1   : > { %965 = vrot.lane.b32.xlu1 %v2735_v17, %s2367_s27 }
 0x2b5   : > { %1015 = vrot.lane.b32.xlu1 %v2732_v14, %s2368_s14 }
 0x321   : > { %v894_v47 = vpop.xlane.xlu1 %893 }
 0x322   : > { %v898_v48 = vsub.f32 %v889_v36, %v894_v47 }
 0x324   : > { %v900_v49 = vmul.f32 1.442695, %v898_v48 }
 0x325   : > { %v897_v50 = vpop.xlane.xlu1 %896 }
 0x326   : > { %2120 = vpow2.f32 %v900_v49  ;;  %v899_v51 = vsub.f32 %v890_v43, %v897_v50 }
 0x328   : > { %v902_v52 = vmul.f32 1.442695, %v899_v51 }
 0x329   : > { %v917_v53 = vpop.permute.xlu1 %916 }
 0x32a   : > { %2122 = vpow2.f32 %v902_v52  ;;  %v923_v54 = vsel %vm921_vm9, %v917_v53, 0 }
 0x32b   : > { %1909 = vmatpush3.bf16.msra.mxu1 %v923_v54 }
 0x32c   : > { %1920 = vmatprep.subr.bf16.mxu1 %v2363_v8 }
 0x32d   : > { %v966_v55 = vpop.permute.xlu1 %965 }
 0x32e   : > { %v971_v56 = vsel %vm921_vm9, %v966_v55, 0 }
 0x32f   : > { %1915 = vmatpush3.bf16.msra.mxu0 %v971_v56 }
 0x330   : > { %1926 = vmatprep.subr.bf16.mxu0 %v2363_v8 }
 0x331   : > { %v1016_v61 = vpop.permute.xlu1 %1015 }
 0x332   : > { %v1021_v4 = vsel %vm780_vm3, %v1016_v61, 0 }
 0x333   : > { %v2121_v57 = vpop.eup %2120 }
 0x334   : > { %v904_v58 = vsel %vm891_vm7, %v2121_v57, 0.0 }
 0x335   : > { %905 = vadd.xlane.f32.xlu0 %v904_v58  ;;  %v2112_v58 = vld [vmem:[%s2676_s7 + $0x8] sm:$0xff]  }
 0x337   : > { %v2123_v59 = vpop.eup %2122 }
 0x338   : > { %v907_v60 = vsel %vm891_vm7, %v2123_v59, 0.0 }
 0x339   : > { %908 = vadd.xlane.f32.xlu1 %v907_v60 }
 0x34a   : > { %1065 = vrot.lane.b32.xlu1 %v2735_v17, %s2368_s14 }
 0x34b   : > { %1013 = vrot.lane.b32.xlu0 %v2732_v14, %s2369_s10 }
 0x34e   : > { %1063 = vrot.lane.b32.xlu1 %v2735_v17, %s2369_s10 }
 0x3be   : > { %v906_v62 = vpop.xlane.xlu0 %905 }
 0x3bf   : > { %2124 = vrcp.f32 %v906_v62 }
 0x3c2   : > { %v909_v63 = vpop.xlane.xlu1 %908  ;;  %v1014_v12 = vpop.permute.xlu0 %1013 }
 0x3c3   : > { %2126 = vrcp.f32 %v909_v63 }
 0x3c6   : > { %v1066_v6 = vpop.permute.xlu1 %1065 }
 0x3c7   : > { %v1071_v9 = vsel %vm780_vm3, %v1066_v6, 0 }
 0x3ca   : > { %v1064_v13 = vpop.permute.xlu1 %1063 }
 0x3cc   : > { %v2125_v0 = vpop.eup %2124 }
 0x3cd   : > { %v912_v1 = vmul.f32 %v2125_v0, %v2121_v57 }
 0x3cf   : > { %v914_v2 = vpack.c.bf16 %v912_v1, %v912_v1 }
 0x3d0   : > { %v2127_v3 = vpop.eup %2126 }
 0x3d1   : > { %1911 = vmatmul.mubr.msk.bf16.vlgmr.msra.gmra.mxu1 %vm891_vm7, %v914_v2  ;;  %v913_v5 = vmul.f32 %v2127_v3, %v2123_v59  ;;  %v2113_v59 = vld [vmem:[%s2676_s7] sm:$0xff]   ;;  %s3042_s7 = scalar_lea.vmem [#allocation7], %s2653_s20  ;;  %s3053_s20 = sld [smem:[#allocation40_spill]] }
 0x3d2   : > { %1921 = vmatpush3.bf16.xpose.msra.mxu1 %v1021_v4  ;;  %1922 = vmatprep.mubr.msk.bf16.mxu1 %vm2364_vm1, %v2363_v8  ;;  %s3043_s24 = smov %s3042_s7 }
 0x3d3   : > { %v915_v7 = vpack.c.bf16 %v913_v5, %v913_v5  ;;  %1932 = vmatprep.subr.bf16.mxu1 %v2363_v8 }
 0x3d5   : > { %1917 = vmatmul.mubr.msk.bf16.vlgmr.msra.gmra.mxu0 %vm891_vm7, %v915_v7 }
 0x3d6   : > { %1927 = vmatpush3.bf16.xpose.msra.mxu0 %v1071_v9  ;;  %1928 = vmatprep.mubr.msk.bf16.mxu0 %vm2364_vm1, %v2363_v8 }
 0x3d7   : > { %1938 = vmatprep.subr.bf16.mxu0 %v2363_v8 }
 0x3d9   : > { %1923 = vmatmul.mubr.msk.bf16.vlgmr.msra.gmra.mxu1 %vm780_vm3, %v1014_v12 }
 0x3da   : > { %1934 = vmatprep.mubr.msk.bf16.mxu1 %vm2364_vm1, %v2363_v8 }
 0x3dd   : > { %1929 = vmatmul.mubr.msk.bf16.vlgmr.msra.gmra.mxu0 %vm780_vm3, %v1064_v13 }
 0x3de   : > { %1940 = vmatprep.mubr.msk.bf16.mxu0 %vm2364_vm1, %v2363_v8 }
 0x491   : > { %v2792_v15 = vpop.f32.mrf.mxu1 }
 0x493   : > { %v1912_v16 = vpop.f32.mrf.mxu1 }
 0x495   : > { %v962_v18 = vpop.f32.mrf.mxu1  ;;  %v2794_v19 = vpop.f32.mrf.mxu0 }
 0x497   : > { %v1913_v20 = vpop.f32.mrf.mxu1  ;;  %v1918_v21 = vpop.f32.mrf.mxu0 }
 0x499   : > { %v1010_v22 = vpop.f32.mrf.mxu0  ;;  %v1057_v23 = vpop.f32.mrf.mxu1 }
 0x49a   : > { %v1113_v24 = vmul.f32 0.25, %v1057_v23 }
 0x49b   : > { %v1919_v25 = vpop.f32.mrf.mxu0  ;;  %v1924_v26 = vpop.f32.mrf.mxu1 }
 0x49c   : > { %v1115_v27 = vsel %vm887_vm6, %v1113_v24, -1000000.0 }
 0x49d   : > { %v1060_v28 = vpop.f32.mrf.mxu1  ;;  %v1107_v29 = vpop.f32.mrf.mxu0  ;;  %v1117_v31 = vsel %vm891_vm7, %v1115_v27, -inf }
 0x49e   : > { %v1114_v32 = vmul.f32 0.25, %v1107_v29  ;;  %1118 = vmax.xlane.f32.xlu1 %v1117_v31 }
 0x49f   : > { %v1925_v34 = vpop.f32.mrf.mxu1  ;;  %v1930_v35 = vpop.f32.mrf.mxu0 }
 0x4a0   : > { %v1116_v36 = vsel %vm888_vm8, %v1114_v32, -1000000.0  ;;  %v2114_v34 = vld [vmem:[%s3042_s7 + $0x8] sm:$0xff]  }
 0x4a1   : > { %v1110_v37 = vpop.f32.mrf.mxu0  ;;  %v1120_v38 = vsel %vm891_vm7, %v1116_v36, -inf  ;;  %v2115_v35 = vld [vmem:[%s3043_s24] sm:$0xff]  }
 0x4a2   : > { %1121 = vmax.xlane.f32.xlu0 %v1120_v38 }
 0x4a3   : > { %v1931_v39 = vpop.f32.mrf.mxu0 }
 0x4b8   : > { %1189 = vrot.lane.b32.xlu0 %v2735_v17, %s2370_s21 }
 0x527   : > { %v1119_v30 = vpop.xlane.xlu1 %1118 }
 0x528   : > { %v1123_v40 = vsub.f32 %v1115_v27, %v1119_v30 }
 0x52a   : > { %v1125_v41 = vmul.f32 1.442695, %v1123_v40 }
 0x52b   : > { %v1122_v42 = vpop.xlane.xlu0 %1121 }
 0x52c   : > { %2128 = vpow2.f32 %v1125_v41  ;;  %v1124_v43 = vsub.f32 %v1116_v36, %v1122_v42  ;;  %v2116_v36 = vld [vmem:[%s2694_s26 + $0x18] sm:$0xff]  }
 0x52e   : > { %v1127_v44 = vmul.f32 1.442695, %v1124_v43 }
 0x52f   : > { %v1190_v45 = vpop.permute.xlu0 %1189 }
 0x530   : > { %2130 = vpow2.f32 %v1127_v44  ;;  %v1195_v33 = vsel %vm921_vm9, %v1190_v45, 0  ;;  %v1831_v44 = vld [vmem:[%s3045_s5] ss:$0 sm:$0xff] }
 0x531   : > { %1939 = vmatpush3.bf16.msra.mxu0 %v1195_v33 }
 0x532   : > { %1952 = vmatprep.subr.bf16.mxu0 %v2363_v8 }
 0x539   : > { %v2129_v46 = vpop.eup %2128 }
 0x53a   : > { %v1129_v47 = vsel %vm891_vm7, %v2129_v46, 0.0 }
 0x53b   : > { %1130 = vadd.xlane.f32.xlu1 %v1129_v47  ;;  %v1832_v47 = vld [vmem:[%s3047_s2] ss:$0 sm:$0xff] }
 0x53d   : > { %v2131_v48 = vpop.eup %2130 }
 0x53e   : > { %v1132_v17 = vsel %vm891_vm7, %v2131_v48, 0.0 }
 0x53f   : > { %1133 = vadd.xlane.f32.xlu1 %v1132_v17 }
 0x550   : > { %1141 = vrot.lane.b32.xlu1 %v2732_v14, %s2370_s21  ;;  %s1857_s21 = sshll.u32 %s2342_s15, 8  ;;  %s2372_s15 = smov [#allocation8]  }
 0x551   : > { %s2230_s9 = sshll.u32 %s2372_s15, 4  ;;  %s2231_s9 = int_to_ptr.vmem [resolvable:$false] %s2230_s9 }
 0x552   : > { %s2232_s8 = scalar_lea.vmem %s2231_s9, 512 }
 0x5c4   : > { %v1131_v49 = vpop.xlane.xlu1 %1130 }
 0x5c5   : > { %2132 = vrcp.f32 %v1131_v49 }
 0x5c8   : > { %v1134_v50 = vpop.xlane.xlu1 %1133 }
 0x5c9   : > { %2134 = vrcp.f32 %v1134_v50 }
 0x5cc   : > { %v1142_v51 = vpop.permute.xlu1 %1141 }
 0x5cd   : > { %v1147_v52 = vsel %vm921_vm9, %v1142_v51, 0  ;;  %v2117_v51 = vld [vmem:[%s2694_s26 + $0x10] sm:$0xff]  }
 0x5ce   : > { %1933 = vmatpush3.bf16.msra.mxu1 %v1147_v52  ;;  %v2118_v52 = vld [vmem:[%s2694_s26 + $0x8] sm:$0xff]  }
 0x5cf   : > { %1944 = vmatprep.subr.bf16.mxu1 %v2363_v8 }
 0x5d2   : > { %v2133_v53 = vpop.eup %2132 }
 0x5d3   : > { %v1137_v54 = vmul.f32 %v2133_v53, %v2129_v46  ;;  %v2119_v53 = vld [vmem:[%s2694_s26] sm:$0xff]  }
 0x5d5   : > { %v1139_v55 = vpack.c.bf16 %v1137_v54, %v1137_v54  ;;  %v1833_v54 = vld [vmem:[%s673_s0] ss:$0 sm:$0xff] }
 0x5d6   : > { %v2135_v56 = vpop.eup %2134 }
 0x5d7   : > { %1935 = vmatmul.mubr.msk.bf16.vlgmr.msra.gmra.mxu1 %vm891_vm7, %v1139_v55  ;;  %v1138_v57 = vmul.f32 %v2135_v56, %v2131_v48 }
 0x5d8   : > { %1948 = vmatprep.mubr.msk.bf16.mxu1 %vm2364_vm1, %v2363_v8  ;;  %1945 = vmatpush3.bf16.msra.mxu1 %v2112_v58 }
 0x5d9   : > { %v1140_v14 = vpack.c.bf16 %v1138_v57, %v1138_v57  ;;  %1946 = vmatprep.subr.bf16.mxu1 %v2363_v8 }
 0x5db   : > { %1941 = vmatmul.mubr.msk.bf16.vlgmr.msra.gmra.mxu0 %vm891_vm7, %v1140_v14 }
 0x5dc   : > { %1956 = vmatprep.mubr.msk.bf16.mxu0 %vm2364_vm1, %v2363_v8  ;;  %1947 = vmatpush3.bf16.msra.mxu1 %v2113_v59 }
 0x5dd   : > { %1960 = vmatprep.subr.bf16.mxu1 %v2363_v8  ;;  %1953 = vmatpush3.bf16.msra.mxu0 %v2114_v34 }
 0x5de   : > { %1954 = vmatprep.subr.bf16.mxu0 %v2363_v8 }
 0x5e1   : > { %1955 = vmatpush3.bf16.msra.mxu0 %v2115_v35 }
 0x697   : > { %v1183_v60 = vpop.f32.mrf.mxu1 }
 0x699   : > { %v1936_v61 = vpop.f32.mrf.mxu1 }
 0x69b   : > { %v1186_v62 = vpop.f32.mrf.mxu1  ;;  %v1231_v63 = vpop.f32.mrf.mxu0 }
 0x69c   : > { %v2105_v0 = vpack.i.bf16 %v1231_v63, %v1183_v60 }
 0x69d   : > { %v1937_v1 = vpop.f32.mrf.mxu1  ;;  %v1942_v2 = vpop.f32.mrf.mxu0 }
 0x69e   : > { %2106 = vrot.lane.b32.xlu1 %v2105_v0, %s2371_s11  ;;  %s1572_s11 = sshll.u32 %s2708_s28, 4  ;;  %s2889_s11 = int_to_ptr.vmem [resolvable:$true] %s1572_s11 }
 0x69f   : > { %v1234_v3 = vpop.f32.mrf.mxu0  ;;  %s2226_s22 = scalar_lea.vmem %s2889_s11, 256  ;;  %p2233_p12 = scmp.lt.s32.totalorder %s2889_s11, %s2231_s9 }
 0x6a0   : > { %p2227_p7 = scmp.ne.s32.totalorder %s2889_s11, %s2226_s22  ;;  %p2234_p5 = scmp.lt.s32.totalorder %s2232_s8, %s2226_s22 }
 0x6a1   : > { %v1943_v4 = vpop.f32.mrf.mxu0 }
 0x6a2   : > { %p2228_p8 = pnand %p2227_p7, %p2560_p11  ;;  %p2235_p0 = por %p2234_p5, %p2233_p12 }
 0x6a4   : > { %p2229_p10 = pneg %p2228_p8 }
 0x6a6   : > { %p2236_p2 = pnand %p2235_p0, %p2229_p10 }
 0x710   : > { %v2107_v5 = vpop.permute.xlu1 %2106 }
 0x711   : > { %v2109_v6 = vunpack.i.h.bf16 %v2107_v5  ;;  %v2108_v7 = vunpack.i.l.bf16 %v2107_v5 }
 0x713   : > { %v1246_v9 = vsel %vm780_vm3, %v2794_v19, %v2109_v6  ;;  %v1245_v12 = vsel %vm780_vm3, %v2792_v15, %v2108_v7 }
 0x714   : > { %v1247_v13 = vpack.c.bf16 %v1246_v9, %v1245_v12 }
 0x716   : > { %1949 = vmatmul.mubr.msk.bf16.vlgmr.msra.gmra.mxu1 %vm723_vm2, %v1247_v13 }
 0x717   : > { %1968 = vmatprep.mubr.msk.bf16.mxu1 %vm2364_vm1, %v2363_v8  ;;  %1961 = vmatpush3.bf16.msra.mxu1 %v2116_v36 }
 0x718   : > { %1962 = vmatprep.subr.bf16.mxu1 %v2363_v8 }
 0x71b   : > { %1963 = vmatpush3.bf16.msra.mxu1 %v2117_v51 }
 0x71c   : > { %1964 = vmatprep.subr.bf16.mxu1 %v2363_v8 }
 0x71f   : > { %1965 = vmatpush3.bf16.msra.mxu1 %v2118_v52 }
 0x720   : > { %1966 = vmatprep.subr.bf16.mxu1 %v2363_v8  ;;  %v1837_v8 = vld [vmem:[%s681_s4] ss:$0 sm:$0xff] }
 0x723   : > { %1967 = vmatpush3.bf16.msra.mxu1 %v2119_v53 }
 0x7d6   : > { %v1301_v16 = vpop.f32.mrf.mxu1 }
 0x7d7   : > { %v1308_v18 = vadd.f32 %v1301_v16, %v2718_v10 }
 0x7d8   : > { %v1950_v20 = vpop.f32.mrf.mxu1 }
 0x7d9   : > { %v1312_v21 = vsel %vm723_vm2, %v1308_v18, 0.0 }
 0x7da   : > { %1313 = vadd.xlane.f32.xlu1 %v1312_v21  ;;  %v1304_v22 = vpop.f32.mrf.mxu1 }
 0x7db   : > { %v1309_v23 = vadd.f32 %v1304_v22, %v2721_v11 }
 0x7dc   : > { %v1951_v19 = vpop.f32.mrf.mxu1 }
 0x7dd   : > { %v1315_v15 = vsel %vm723_vm2, %v1309_v23, 0.0 }
 0x7de   : > { %1316 = vadd.xlane.f32.xlu0 %v1315_v15 }
 0x863   : > { %v1314_v24 = vpop.xlane.xlu1 %1313 }
 0x864   : > { %v1319_v25 = vmul.f32 0.03125, %v1314_v24 }
 0x866   : > { %v1321_v26 = vsub.f32 %v1308_v18, %v1319_v25 }
 0x867   : > { %v1317_v27 = vpop.xlane.xlu0 %1316 }
 0x868   : > { %v1320_v28 = vmul.f32 0.03125, %v1317_v27  ;;  %v1323_v10 = vmul.f32 %v1321_v26, %v1321_v26 }
 0x86a   : > { %v1322_v29 = vsub.f32 %v1309_v23, %v1320_v28  ;;  %v1325_v31 = vsel %vm723_vm2, %v1323_v10, 0.0 }
 0x86b   : > { %1326 = vadd.xlane.f32.xlu0 %v1325_v31  ;;  %v1843_v31 = vld [vmem:[%s684_s23] ss:$0 sm:$0xff]  ;;  %s2887_s23 = scalar_lea.hbm %s3053_s20, %s1857_s21 }
 0x86c   : > { %v1324_v32 = vmul.f32 %v1322_v29, %v1322_v29 }
 0x86e   : > { %v1328_v11 = vsel %vm723_vm2, %v1324_v32, 0.0 }
 0x86f   : > { %1329 = vadd.xlane.f32.xlu1 %v1328_v11  ;;  %v1844_v11 = vld [vmem:[%s687_s6] ss:$0 sm:$0xff]  ;;  %s1559_s6 = scalar_lea.sflag [#allocation4], %s2643_s13 }
 0x8f4   : > { %v1327_v37 = vpop.xlane.xlu0 %1326 }
 0x8f5   : > { %v1331_v38 = vmul.f32 0.03125, %v1327_v37 }
 0x8f7   : > { %v1333_v39 = vadd.f32 1e-05, %v1331_v38 }
 0x8f8   : > { %v1330_v30 = vpop.xlane.xlu1 %1329 }
 0x8f9   : > { %2136 = vrsqrt.f32 %v1333_v39  ;;  %v1332_v40 = vmul.f32 0.03125, %v1330_v30 }
 0x8fb   : > { %v1334_v41 = vadd.f32 1e-05, %v1332_v40 }
 0x8fd   : > { %2138 = vrsqrt.f32 %v1334_v41 }
 0x906   : > { %v2137_v42 = vpop.eup %2136 }
 0x907   : > { %v1337_v43 = vmul.f32 %v2137_v42, %v1321_v26 }
 0x909   : > { %v1345_v46 = vmul.f32 %v1831_v44, %v1337_v43 }
 0x90a   : > { %v2139_v45 = vpop.eup %2138 }
 0x90b   : > { %v1338_v33 = vmul.f32 %v2139_v45, %v1322_v29  ;;  %v1353_v17 = vadd.f32 %v1832_v47, %v1345_v46 }
 0x90d   : > { %v1346_v48 = vmul.f32 %v1831_v44, %v1338_v33 }
 0x90f   : > { %v1354_v49 = vadd.f32 %v1832_v47, %v1346_v48 }
 0x911   : > { %v1355_v50 = vpack.c.bf16 %v1354_v49, %v1353_v17 }
 0x913   : > { %1957 = vmatmul.mubr.msk.bf16.vlgmr.msra.gmra.mxu0 %vm723_vm2, %v1355_v50 }
 0x9d3   : > { %v1416_v55 = vpop.f32.mrf.mxu0 }
 0x9d4   : > { %v1417_v57 = vadd.f32 %v1833_v54, %v1416_v55 }
 0x9d5   : > { %v1958_v56 = vpop.f32.mrf.mxu0 }
 0x9d6   : > { %v1423_v60 = vmax.f32 %v1417_v57, 0.0 }
 0x9d7   : > { %v1419_v14 = vpop.f32.mrf.mxu0 }
 0x9d8   : > { %v1420_v58 = vadd.f32 %v1833_v54, %v1419_v14 }
 0x9d9   : > { %v1959_v59 = vpop.f32.mrf.mxu0 }
 0x9da   : > { %v1424_v61 = vmax.f32 %v1420_v58, 0.0 }
 0x9dc   : > { %v1425_v62 = vpack.c.bf16 %v1424_v61, %v1423_v60 }
 0x9de   : > { %1969 = vmatmul.mubr.msk.bf16.vlgmr.msra.gmra.mxu1 %vm1465_vm10, %v1425_v62 }
 0xa9e   : > { %v1503_v63 = vpop.f32.mrf.mxu1 }
 0xa9f   : > { %v1504_v0 = vadd.f32 %v1837_v8, %v1503_v63 }
 0xaa0   : > { %v1970_v1 = vpop.f32.mrf.mxu1 }
 0xaa1   : > { %v1510_v2 = vadd.f32 %v1504_v0, %v1353_v17 }
 0xaa2   : > { %v1506_v3 = vpop.f32.mrf.mxu1 }
 0xaa3   : > { %v1507_v4 = vadd.f32 %v1837_v8, %v1506_v3  ;;  %v1514_v5 = vsel %vm723_vm2, %v1510_v2, 0.0 }
 0xaa4   : > { %1515 = vadd.xlane.f32.xlu0 %v1514_v5  ;;  %v1971_v6 = vpop.f32.mrf.mxu1 }
 0xaa5   : > { %v1511_v7 = vadd.f32 %v1507_v4, %v1354_v49 }
 0xaa7   : > { %v1517_v9 = vsel %vm723_vm2, %v1511_v7, 0.0 }
 0xaa8   : > { %1518 = vadd.xlane.f32.xlu1 %v1517_v9 }
 0xb2d   : > { %v1516_v12 = vpop.xlane.xlu0 %1515 }
 0xb2e   : > { %v1520_v13 = vmul.f32 0.03125, %v1516_v12 }
 0xb30   : > { %v1522_v16 = vsub.f32 %v1510_v2, %v1520_v13 }
 0xb31   : > { %v1519_v18 = vpop.xlane.xlu1 %1518 }
 0xb32   : > { %v1521_v20 = vmul.f32 0.03125, %v1519_v18  ;;  %v1524_v21 = vmul.f32 %v1522_v16, %v1522_v16 }
 0xb34   : > { %v1523_v22 = vsub.f32 %v1511_v7, %v1521_v20  ;;  %v1526_v23 = vsel %vm723_vm2, %v1524_v21, 0.0 }
 0xb35   : > { %1527 = vadd.xlane.f32.xlu0 %v1526_v23 }
 0xb36   : > { %v1525_v19 = vmul.f32 %v1523_v22, %v1523_v22 }
 0xb38   : > { %v1529_v15 = vsel %vm723_vm2, %v1525_v19, 0.0 }
 0xb39   : > { %1530 = vadd.xlane.f32.xlu1 %v1529_v15 }
 0xbbe   : > { %v1528_v24 = vpop.xlane.xlu0 %1527 }
 0xbbf   : > { %v1532_v25 = vmul.f32 0.03125, %v1528_v24 }
 0xbc1   : > { %v1534_v26 = vadd.f32 1e-05, %v1532_v25 }
 0xbc2   : > { %v1531_v27 = vpop.xlane.xlu1 %1530 }
 0xbc3   : > { %2140 = vrsqrt.f32 %v1534_v26  ;;  %v1533_v28 = vmul.f32 0.03125, %v1531_v27 }
 0xbc5   : > { %v1535_v10 = vadd.f32 1e-05, %v1533_v28 }
 0xbc7   : > { %2142 = vrsqrt.f32 %v1535_v10 }
 0xbd0   : > { %v2141_v29 = vpop.eup %2140 }
 0xbd1   : > { %v1538_v32 = vmul.f32 %v2141_v29, %v1522_v16 }
 0xbd3   : > { %v1546_v34 = vmul.f32 %v1843_v31, %v1538_v32 }
 0xbd4   : > { %v2143_v35 = vpop.eup %2142 }
 0xbd5   : > { %v1539_v36 = vmul.f32 %v2143_v35, %v1523_v22  ;;  %v1554_v37 = vadd.f32 %v1844_v11, %v1546_v34 }
 0xbd7   : > { %v1547_v38 = vmul.f32 %v1843_v31, %v1539_v36  ;;  %1556 = vst.msk [vmem:[%s2708_s28] sm:$0xff] %vm723_vm2, %v1554_v37 }
 0xbd9   : > { %v1555_v39 = vadd.f32 %v1844_v11, %v1547_v38 }
 0xbdb   : > { %1557 = vst.msk [vmem:[%s2708_s28 + $0x8] sm:$0xff] %vm723_vm2, %v1555_v39 }
 0xbdc   : > { %2239 = shalt.err (!%p2236_p2)
}
 0xbdd   : > { %s2240_s28 = scalar_lea.hbm %s2887_s23, 256  ;;  %s2244_s25 = scalar_lea.hbm %s3053_s20, 512 }
 0xbde   : > { %p2241_p3 = scmp.ne.s32.totalorder %s2887_s23, %s2240_s28  ;;  %p2245_p1 = scmp.lt.s32.totalorder %s2887_s23, %s3053_s20 }
 0xbdf   : > { %p2246_p6 = scmp.lt.s32.totalorder %s2244_s25, %s2240_s28 }
 0xbe0   : > { %p2242_p13 = pnand %p2241_p3, %p2560_p11 }
 0xbe1   : > { %p2247_p9 = por %p2246_p6, %p2245_p1 }
 0xbe2   : > { %p2243_p4 = pneg %p2242_p13 }
 0xbe4   : > { %p2248_p7 = pnand %p2247_p9, %p2243_p4 }
 0xbe6   : > { %2251 = shalt.err (!%p2248_p7)
}
 0xbe7   : > { %s2373_s17 = smov 128   ;;  %s2374_s16 = smov 8  }
 0xbe8   : > { %1980 = dma.vmem_to_hbm [thread:$0]  (%p2560_p11), %s2889_s11, 256, %s2887_s23, %s1559_s6, %s2373_s17, %s2373_s17, %s2374_s16  }
 0xbe9 PF: > { %s3054_s19 = sld [smem:[#allocation20_spill]] }
 0xbea   : > { %s3055_s30 = sld [smem:[#allocation15_spill]] }
 0xbeb   : > { %s3056_s29 = sld [smem:[#allocation22_spill]] }
 0xbef   : > { %p2000_p8 = scmp.ge.s32.totalorder %s3054_s19, 2 }
 0xbf0   : > { %s1587_s26 = sand.u32 1, %s3055_s30  }
 0xbf1   : > { %p3057_p10 = scmp.ne.s32.totalorder %s3056_s29, 0  ;;  %s1588_s0 = scalar_lea.sflag [#allocation4], %s1587_s26 }
 0xbf3   : > { %p1994_p12 = pnand %p2000_p8, %p3057_p10 }
 0xbf5   : > { %p1995_p5 = pneg %p1994_p12 }
 0xbf7   : > { %2309 = dma.done.wait (%p1995_p5), %s1588_s0, 256  }
 0xbf8   : > { %2311 = vsyncadd (%p1995_p5), %s1588_s0, 4294967040  ;;  %s30_s18 = sadd.s32 1, %s3054_s19   ;;  %s3058_s25 = sld [smem:[#allocation13_spill]] }
 0xbf9   : > { %p27_p0 = scmp.ge.s32.totalorder %s30_s18, 6   ;;  %s3059_s26 = sld [smem:[#allocation14_spill]] }
 0xbfa   : > { %s3060_s27 = sld [smem:[#allocation25_spill]] }
 0xbfb   : > { %s3061_s28 = sld [smem:[#allocation16_spill]] }
 0xbfc   : > { %s3062_s29 = sld [smem:[#allocation17_spill]] }
 0xbfd   : > { %s3063_s30 = sld [smem:[#allocation26_spill]]  ;;  %29 = sbr.rel (!%p27_p0) target bundleno = 25 (0x19), region = 167 }
 0xbfe   : > { %s3064_s14 = sld [smem:[#allocation18_spill]] }
 0xbff   : > { %s3065_s15 = sld [smem:[#allocation19_spill]] }
 0xc00   : > { %s3066_s16 = sld [smem:[#allocation23_spill]] }
 0xc01   : > { %s3067_s17 = sld [smem:[#allocation24_spill]] }
 0xc02   :  { %1593 = vsyncpa [#allocation3], 1 }
 0xc03   :  { %1595 = vsyncpa [#allocation3 + $0x1], 1 }
 0xc04   :  { %1596 = vsyncpa [#allocation6], 1 }
 0xc05   :  { %1598 = vsyncpa [#allocation6 + $0x1], 1 }
 0xc06   :  { %1599 = vsyncpa [#allocation4], 1 }
 0xc07   :  { %1601 = vsyncpa [#allocation4 + $0x1], 1 }

</bundles_post_ra>
